<compile_context>
chip_gen: v5e
topology: v5e:2x2
jax: 0.10.0
libtpu: 0.0.40
codegen_flags: <defaults>
</compile_context>

<pallas_src>
from functools import lru_cache

import numpy as np
import jax
import jax.numpy as jnp
from jax import lax
from jax.experimental import pallas as pl
from jax.experimental.pallas import tpu as pltpu

NEG_SLOPE = 0.2


def _lrelu(x):
    return jnp.where(x > 0, x, NEG_SLOPE * x)


# ----------------------- wrapper-side weight repacking -----------------------
def _band3(w, W):
    """(3,3,Ci,Co) HWIO -> (3, W*Ci, W*Co) banded mats, column padding folded.

    A[dy][c*Ci+ci, x*Co+co] = w[dy, c-x+1, ci, co] for 0 <= c-x+1 <= 2 else 0,
    so conv output row y = sum_dy  row_pad[y+dy] @ A[dy]  with UNPADDED cols.
    """
    kh, kw, Ci, Co = w.shape
    c = np.arange(W)[:, None, None]
    d = np.arange(kw)[None, :, None]
    j = np.arange(W)[None, None, :]
    sel = jnp.asarray((c == j + d - 1).astype(np.float32))      # (W, 3, W)
    a = jnp.einsum("cdj,ydio->ycijo", sel, w)                    # (3,W,Ci,W,Co)
    return a.reshape(kh, W * Ci, W * Co)


def _band_down(wd, W):
    """(4,4,Ci,Co) stride-2 conv -> (4, W*Ci, (W//2)*Co), padding folded."""
    kh, kw, Ci, Co = wd.shape
    Wd = W // 2
    c = np.arange(W)[:, None, None]
    d = np.arange(kw)[None, :, None]
    j = np.arange(Wd)[None, None, :]
    sel = jnp.asarray((c == 2 * j + d - 1).astype(np.float32))   # (W, 4, Wd)
    a = jnp.einsum("cdj,ydio->ycijo", sel, wd)
    return a.reshape(kh, W * Ci, Wd * Co)


def _shortcut_mat(ws, W):
    """(1,1,Ci,Co) 1x1 conv -> (W*Ci, W*Co) block-diagonal matrix."""
    Ci, Co = ws.shape[2], ws.shape[3]
    eye = jnp.asarray(np.eye(W, dtype=np.float32))
    a = jnp.einsum("cj,io->cijo", eye, ws[0, 0])
    return a.reshape(W * Ci, W * Co)


@lru_cache(maxsize=None)
def _row_select_np(B, H, pack):
    """0/1 gather matrix for the stride-2 row phases over the stacked slab.

    Row (dy, b, s) -> dy*B*Hdp + b*Hdp + s selects padded residual row
    b*(H+2) + 2*pack*s + dy, so that down-output row i = pack*s + p uses
    taps dy = 2p + dy', dy' in 0..3.
    """
    Hp, Hd = H + 2, H // 2
    Hdp = Hd // pack
    taps = 2 * pack + 2
    r = np.zeros((taps * B * Hdp, B * Hp), np.float32)
    for dy in range(taps):
        for b in range(B):
            for s in range(Hdp):
                r[dy * B * Hdp + b * Hdp + s, b * Hp + 2 * pack * s + dy] = 1.0
    return r


def _pick_batch_block(N, H):
    """Largest divisor of N giving ~128 stacked rows, keeping >=2 grid steps."""
    target = max(1, 128 // (H + 2))
    cap = max(1, N // 2) if N >= 2 else 1
    best = 1
    for b in range(1, min(N, target, cap) + 1):
        if N % b == 0:
            best = b
    return best


def _default_fuse_shortcut():
    try:
        kind = jax.devices()[0].device_kind.lower()
    except Exception:
        return True
    # v5e and older have a 128-wide MXU: keep per-matmul N <= 128 there.
    return not any(g in kind for g in ("v2", "v3", "v4", "v5"))


def pack_params(params, H, W, *, down=True, fuse_shortcut=None,
                compute_dtype=jnp.bfloat16):
    """Hoistable weight repacking (cache the result across calls)."""
    if fuse_shortcut is None:
        fuse_shortcut = _default_fuse_shortcut()
    w1, b1 = params["w1"], params["b1"]
    w2, b2 = params["w2"], params["b2"]
    ws, bs = params["ws"], params["bs"]
    Cin, Cout = w1.shape[2], w2.shape[3]
    cd = compute_dtype
    WCi, WCo = W * Cin, W * Cout

    a1 = _band3(w1, W)                                  # (3, WCi, WCi)
    a2 = _band3(w2, W)                                  # (3, WCi, WCo)
    b1t = jnp.tile(b1, W)[None, :].astype(jnp.float32)  # (1, WCi)
    b2t = jnp.tile(b2, W)[None, :].astype(jnp.float32)  # (1, WCo)
    bst = jnp.tile(bs, W)[None, :].astype(jnp.float32)  # (1, WCo)
    ssc = _shortcut_mat(ws, W)                          # (WCi, WCo)

    packed = dict(down=down, fused=bool(fuse_shortcut), compute_dtype=cd,
                  H=H, W=W, Cin=Cin, Cout=Cout)
    if fuse_shortcut:
        # fused conv_1 weight: [shortcut block (WCo, only dy=1) | 3x3 band].
        # Identity columns first so both column slices are vreg(128)-aligned.
        scblk = jnp.zeros((3, WCi, WCo), jnp.float32).at[1].set(ssc)
        packed["a1"] = jnp.concatenate([scblk, a1], axis=-1).astype(cd)
        packed["bias1"] = jnp.concatenate([bst, b1t], axis=-1)
    else:
        packed["a1"] = a1.astype(cd)
        packed["bias1"] = b1t
        packed["ssc"] = ssc.astype(cd)
        packed["bsr"] = bst
    packed["a2"] = a2.astype(cd)
    packed["b2r"] = b2t

    if down:
        assert H % 2 == 0 and W % 2 == 0, "down path needs even H and W"
        Hd, Wd = H // 2, W // 2
        WdCo = Wd * Cout
        pack = 2 if (WdCo % 128 != 0 and Hd % 2 == 0) else 1
        bd4 = _band_down(params["wd"], W)               # (4, WCo, WdCo)
        if pack == 1:
            bdp = bd4
        else:
            taps = 2 * pack + 2
            bdp = jnp.zeros((taps, WCo, pack * WdCo), jnp.float32)
            for p in range(pack):
                bdp = bdp.at[2 * p:2 * p + 4, :, p * WdCo:(p + 1) * WdCo].set(bd4)
        packed["bd"] = bdp.astype(cd)
        packed["pack"] = pack
    return packed


# --------------------------------- kernel ------------------------------------
def _make_kernel(B, H, W, Cin, Cout, *, down, fused, pack, cdtype):
    Hp = H + 2
    M = B * Hp                      # stacked padded rows
    Meff = M - 2                    # rows carrying (possibly junk) conv output
    WCi, WCo = W * Cin, W * Cout
    f32 = jnp.float32
    if down:
        Hd, Wd = H // 2, W // 2
        Hdp = Hd // pack
        taps = 2 * pack + 2
        rows_d = B * Hdp

    def body(x_ref, a1_ref, b1_ref, a2_ref, b2_ref, ssc_ref, bs_ref,
             rsel_ref, bd_ref, out_ref, down_ref, xp_ref, rp_ref):
        # --- re-establish the zero border rows (2 per image) every step.
        # Interior rows are fully overwritten below; with the column padding
        # folded into the weights no column border exists.  Done per step so
        # correctness never depends on which core ran program 0.
        xp_ref[0:1, :] = jnp.zeros((1, WCi), cdtype)
        xp_ref[M - 1:M, :] = jnp.zeros((1, WCi), cdtype)
        for b in range(B - 1):
            xp_ref[b * Hp + H + 1:b * Hp + H + 3, :] = jnp.zeros((2, WCi), cdtype)
        if down:
            rp_ref[0:1, :] = jnp.zeros((1, WCo), cdtype)
            rp_ref[M - 1:M, :] = jnp.zeros((1, WCo), cdtype)
            for b in range(B - 1):
                rp_ref[b * Hp + H + 1:b * Hp + H + 3, :] = jnp.zeros((2, WCo),
                                                                     cdtype)

        # --- stack the B input images into their padded row windows
        # (lane offset 0, aligned stores).
        for b in range(B):
            xp_ref[b * Hp + 1:b * Hp + 1 + H, :] = x_ref[b]

        # --- conv_1 (3x3, Cin->Cin) as 3 banded matmuls over the whole stack;
        # bias folded into the dy=0 term.  In fused mode a1 also carries the
        # 1x1 shortcut in its leading WCo output columns (dy=1 tap only).
        acc1 = jnp.dot(xp_ref[0:Meff, :], a1_ref[0],
                       preferred_element_type=f32) + b1_ref[...]
        for dy in (1, 2):
            acc1 = acc1 + jnp.dot(xp_ref[dy:dy + Meff, :], a1_ref[dy],
                                  preferred_element_type=f32)
        if fused:
            identity = acc1[:, :WCo]                 # vreg-aligned column split
            h1 = _lrelu(acc1[:, WCo:])
        else:
            # must read xp before it is overwritten with h1 below
            identity = jnp.dot(xp_ref[1:1 + Meff, :], ssc_ref[...],
                               preferred_element_type=f32) + bs_ref[...]
            h1 = _lrelu(acc1)

        # --- reuse xp as the zero-padded h1 buffer (conv_1 keeps Cin channels;
        # border rows are still zero, interior fully overwritten).
        for b in range(B):
            xp_ref[b * Hp + 1:b * Hp + 1 + H, :] = (
                h1[b * Hp:b * Hp + H, :].astype(cdtype))

        # --- conv_2 (3x3, Cin->Cout)
        acc2 = jnp.dot(xp_ref[0:Meff, :], a2_ref[0],
                       preferred_element_type=f32) + b2_ref[...]
        for dy in (1, 2):
            acc2 = acc2 + jnp.dot(xp_ref[dy:dy + Meff, :], a2_ref[dy],
                                  preferred_element_type=f32)
        res = _lrelu(acc2) + identity                # (Meff, WCo), f32

        # --- main output: each image's H-row window of the stacked result
        for b in range(B):
            out_ref[b] = res[b * Hp:b * Hp + H, :]

        if down:
            # zero-padded residual, then 4x4/stride-2 conv (no bias).  Row
            # phases are gathered with a 0/1 matmul (no strided VMEM access);
            # `pack` output rows are emitted side by side so the output slab
            # is a full 128 lanes wide.
            for b in range(B):
                rp_ref[b * Hp + 1:b * Hp + 1 + H, :] = (
                    res[b * Hp:b * Hp + H, :].astype(cdtype))
            gathered = jnp.dot(rsel_ref[...], rp_ref[...],
                               preferred_element_type=f32).astype(cdtype)
            accd = jnp.dot(gathered[0:rows_d, :], bd_ref[0],
                           preferred_element_type=f32)
            for dy in range(1, taps):
                accd = accd + jnp.dot(
                    gathered[dy * rows_d:(dy + 1) * rows_d, :], bd_ref[dy],
                    preferred_element_type=f32)
            for b in range(B):
                down_ref[b] = accd[b * Hdp:(b + 1) * Hdp, :]

    # bind the signature to the actual argument list
    if fused and down:
        def kernel(x, a1, b1, a2, b2, rsel, bd, out, dwn, xp, rp):
            body(x, a1, b1, a2, b2, None, None, rsel, bd, out, dwn, xp, rp)
    elif fused:
        def kernel(x, a1, b1, a2, b2, out, xp):
            body(x, a1, b1, a2, b2, None, None, None, None, out, None, xp, None)
    elif down:
        def kernel(x, a1, b1, a2, b2, ssc, bs, rsel, bd, out, dwn, xp, rp):
            body(x, a1, b1, a2, b2, ssc, bs, rsel, bd, out, dwn, xp, rp)
    else:
        def kernel(x, a1, b1, a2, b2, ssc, bs, out, xp):
            body(x, a1, b1, a2, b2, ssc, bs, None, None, out, None, xp, None)
    return kernel


# --------------------------------- wrapper -----------------------------------
def resblock_down(x, packed, *, batch_block=None):
    N, H, W, Cin = x.shape
    assert H == packed["H"] and W == packed["W"] and Cin == packed["Cin"]
    Cout, down, fused = packed["Cout"], packed["down"], packed["fused"]
    cd = packed["compute_dtype"]
    pack = packed.get("pack", 1)
    Hp = H + 2
    B = batch_block if batch_block is not None else _pick_batch_block(N, H)
    assert N % B == 0, (N, B)
    WCi, WCo = W * Cin, W * Cout
    Hd, Wd = H // 2, W // 2

    x_flat = x.reshape(N, H, WCi).astype(cd)
    Naug = packed["a1"].shape[-1]

    args = [x_flat, packed["a1"], packed["bias1"], packed["a2"], packed["b2r"]]
    in_specs = [
        pl.BlockSpec((B, H, WCi), lambda g: (g, 0, 0)),
        pl.BlockSpec((3, WCi, Naug), lambda g: (0, 0, 0)),
        pl.BlockSpec((1, Naug), lambda g: (0, 0)),
        pl.BlockSpec((3, WCi, WCo), lambda g: (0, 0, 0)),
        pl.BlockSpec((1, WCo), lambda g: (0, 0)),
    ]
    if not fused:
        args += [packed["ssc"], packed["bsr"]]
        in_specs += [pl.BlockSpec((WCi, WCo), lambda g: (0, 0)),
                     pl.BlockSpec((1, WCo), lambda g: (0, 0))]
    scratch = [pltpu.VMEM((B * Hp, WCi), cd)]

    if down:
        Hdp = Hd // pack
        taps = 2 * pack + 2
        rsel = jnp.asarray(_row_select_np(B, H, pack), dtype=cd)
        args += [rsel, packed["bd"]]
        in_specs += [
            pl.BlockSpec((taps * B * Hdp, B * Hp), lambda g: (0, 0)),
            pl.BlockSpec((taps, WCo, pack * Wd * Cout), lambda g: (0, 0, 0)),
        ]
        out_shape = (jax.ShapeDtypeStruct((N, H, WCo), jnp.float32),
                     jax.ShapeDtypeStruct((N, Hdp, pack * Wd * Cout),
                                          jnp.float32))
        out_specs = (pl.BlockSpec((B, H, WCo), lambda g: (g, 0, 0)),
                     pl.BlockSpec((B, Hdp, pack * Wd * Cout),
                                  lambda g: (g, 0, 0)))
        scratch.append(pltpu.VMEM((B * Hp, WCo), cd))
    else:
        out_shape = jax.ShapeDtypeStruct((N, H, WCo), jnp.float32)
        out_specs = pl.BlockSpec((B, H, WCo), lambda g: (g, 0, 0))

    result = pl.pallas_call(
        _make_kernel(B, H, W, Cin, Cout, down=down, fused=fused,
                     pack=pack, cdtype=cd),
        out_shape=out_shape,
        grid=(N // B,),
        in_specs=in_specs,
        out_specs=out_specs,
        scratch_shapes=scratch,
        compiler_params=pltpu.CompilerParams(
            dimension_semantics=("parallel",),      # batch blocks independent
            vmem_limit_bytes=64 * 1024 * 1024),
    )(*args)

    if down:
        out_flat, down_flat = result
        return (down_flat.reshape(N, Hd, Wd, Cout),
                out_flat.reshape(N, H, W, Cout))
    return result.reshape(N, H, W, Cout)


# ---------------------------- pure-JAX reference ----------------------------
def reference(x, params, *, down=True, operand_dtype=None):
    """High-precision reference; operand_dtype=bf16 gives a precision-matched
    reference for the bf16 kernel path (same operand roundings, f32 accum)."""
    cast = (lambda a: a.astype(operand_dtype)) if operand_dtype is not None \
        else (lambda a: a)

    def conv(a, w, stride, pad):
        return lax.conv_general_dilated(
            cast(a), cast(w), window_strides=(stride, stride), padding=pad,
            dimension_numbers=("NHWC", "HWIO", "NHWC"),
            preferred_element_type=jnp.float32,
            precision=lax.Precision.HIGHEST)

    identity = conv(x, params["ws"], 1, [(0, 0), (0, 0)]) + params["bs"]
    h = _lrelu(conv(x, params["w1"], 1, [(1, 1), (1, 1)]) + params["b1"])
    h = _lrelu(conv(h, params["w2"], 1, [(1, 1), (1, 1)]) + params["b2"])
    out = h + identity
    if not down:
        return out
    out_down = conv(out, params["wd"], 2, [(1, 1), (1, 1)])
    return out_down, out


# ------------------------------------ main -----------------------------------
if __name__ == "__main__":
    N, H, W = 2, 16, 16
    in_chl, out_chl = 4, 8

    key = jax.random.PRNGKey(0)
    ks = jax.random.split(key, 9)
    params = {
        "w1": 0.2 * jax.random.normal(ks[0], (3, 3, in_chl, in_chl), jnp.float32),
        "b1": 0.1 * jax.random.normal(ks[1], (in_chl,), jnp.float32),
        "w2": 0.2 * jax.random.normal(ks[2], (3, 3, in_chl, out_chl), jnp.float32),
        "b2": 0.1 * jax.random.normal(ks[3], (out_chl,), jnp.float32),
        "ws": 0.2 * jax.random.normal(ks[4], (1, 1, in_chl, out_chl), jnp.float32),
        "bs": 0.1 * jax.random.normal(ks[5], (out_chl,), jnp.float32),
        "wd": 0.2 * jax.random.normal(ks[6], (4, 4, out_chl, out_chl), jnp.float32),
    }
    x = jax.random.normal(ks[7], (N, H, W, in_chl), jnp.float32)
    x8 = jax.random.normal(ks[8], (8, H, W, in_chl), jnp.float32)

    ref_bf_down, ref_bf_out = reference(x, params, down=True,
                                        operand_dtype=jnp.bfloat16)
    ref_f32_down, ref_f32_out = reference(x, params, down=True)
    ref8_bf_down, ref8_bf_out = reference(x8, params, down=True,
                                          operand_dtype=jnp.bfloat16)

    def check(a, b, rtol, atol, name):
        a, b = np.asarray(a), np.asarray(b)
        assert a.shape == b.shape, (name, a.shape, b.shape)
        assert np.allclose(a, b, rtol=rtol, atol=atol), (
            name, float(np.max(np.abs(a - b))))

    # 1) default bf16 path (auto shortcut fusion), with down conv
    pk = pack_params(params, H, W, down=True)
    dwn, out = jax.block_until_ready(resblock_down(x, pk))
    assert out.shape == (N, H, W, out_chl)
    assert dwn.shape == (N, H // 2, W // 2, out_chl)
    check(out, ref_bf_out, 2e-3, 5e-3, "out/bf16")
    check(dwn, ref_bf_down, 2e-3, 5e-3, "down/bf16")

    # 2) batch-stacked path (8 images, 4 per grid step), fused shortcut
    pk8 = pack_params(params, H, W, down=True, fuse_shortcut=True)
    dwn8, out8 = jax.block_until_ready(resblock_down(x8, pk8))
    check(out8, ref8_bf_out, 2e-3, 5e-3, "out/bf16/stacked")
    check(dwn8, ref8_bf_down, 2e-3, 5e-3, "down/bf16/stacked")

    # 3) v5e-style path: shortcut kept as its own matmul
    pk_nf = pack_params(params, H, W, down=True, fuse_shortcut=False)
    dwn_nf, out_nf = jax.block_until_ready(resblock_down(x, pk_nf))
    check(out_nf, ref_bf_out, 2e-3, 5e-3, "out/bf16/nofuse")
    check(dwn_nf, ref_bf_down, 2e-3, 5e-3, "down/bf16/nofuse")

    # 4) down=False
    pk_nd = pack_params(params, H, W, down=False)
    out_nd = jax.block_until_ready(resblock_down(x, pk_nd))
    check(out_nd, ref_bf_out, 2e-3, 5e-3, "out/bf16/nodown")

    # 5) full-f32 compute path, checked tight against the f32 reference
    pk_f32 = pack_params(params, H, W, down=True, compute_dtype=jnp.float32)
    dwn_f, out_f = jax.block_until_ready(resblock_down(x, pk_f32))
    check(out_f, ref_f32_out, 5e-4, 5e-4, "out/f32")
    check(dwn_f, ref_f32_down, 5e-4, 5e-4, "down/f32")

    print("KERNEL_OK")
</pallas_src>

<mosaic_0001>
module attributes {stable_mosaic.version = 11 : i64} {
  func.func @kernel(%arg0: i32, %arg1: memref<1x16x64xbf16, #tpu.memory_space<vmem>>, %arg2: memref<3x64x192xbf16, #tpu.memory_space<vmem>>, %arg3: memref<1x192xf32, #tpu.memory_space<vmem>>, %arg4: memref<3x64x128xbf16, #tpu.memory_space<vmem>>, %arg5: memref<1x128xf32, #tpu.memory_space<vmem>>, %arg6: memref<24x18xbf16, #tpu.memory_space<vmem>>, %arg7: memref<6x128x128xbf16, #tpu.memory_space<vmem>>, %arg8: memref<1x16x128xf32, #tpu.memory_space<vmem>>, %arg9: memref<1x4x128xf32, #tpu.memory_space<vmem>>, %arg10: memref<18x64xbf16, #tpu.memory_space<vmem>>, %arg11: memref<18x128xbf16, #tpu.memory_space<vmem>>) attributes {dimension_semantics = [#tpu.dimension_semantics<parallel>], iteration_bounds = array<i64: 2>, scalar_prefetch = 0 : i64, scratch_operands = 2 : i64, tpu.core_type = #tpu.core_type<tc>, window_params = [{transform_indices = @transform_0, window_bounds = array<i64: 1, 16, 64>}, {pipeline_mode = #tpu.pipeline_mode<synchronous>, transform_indices = @transform_1, window_bounds = array<i64: 3, 64, 192>}, {pipeline_mode = #tpu.pipeline_mode<synchronous>, transform_indices = @transform_2, window_bounds = array<i64: 1, 192>}, {pipeline_mode = #tpu.pipeline_mode<synchronous>, transform_indices = @transform_3, window_bounds = array<i64: 3, 64, 128>}, {pipeline_mode = #tpu.pipeline_mode<synchronous>, transform_indices = @transform_4, window_bounds = array<i64: 1, 128>}, {pipeline_mode = #tpu.pipeline_mode<synchronous>, transform_indices = @transform_5, window_bounds = array<i64: 24, 18>}, {pipeline_mode = #tpu.pipeline_mode<synchronous>, transform_indices = @transform_6, window_bounds = array<i64: 6, 128, 128>}, {transform_indices = @transform_7, window_bounds = array<i64: 1, 16, 128>}, {transform_indices = @transform_8, window_bounds = array<i64: 1, 4, 128>}]} {
    %cst = arith.constant 0.000000e+00 : bf16
    %0 = vector.broadcast %cst : bf16 to vector<1x64xbf16>
    %c0 = arith.constant 0 : index
    %c0_0 = arith.constant 0 : index
    %1 = vector.load %arg10[%c0, %c0_0] : memref<18x64xbf16, #tpu.memory_space<vmem>>, vector<1x64xbf16>
    tpu.vector_store %arg10[%c0, %c0_0], %0 {strides = array<i32>} : memref<18x64xbf16, #tpu.memory_space<vmem>>, vector<1x64xbf16>,
    %cst_1 = arith.constant 0.000000e+00 : bf16
    %2 = vector.broadcast %cst_1 : bf16 to vector<1x64xbf16>
    %c17 = arith.constant 17 : index
    %c0_2 = arith.constant 0 : index
    %3 = vector.load %arg10[%c17, %c0_2] : memref<18x64xbf16, #tpu.memory_space<vmem>>, vector<1x64xbf16>
    tpu.vector_store %arg10[%c17, %c0_2], %2 {strides = array<i32>} : memref<18x64xbf16, #tpu.memory_space<vmem>>, vector<1x64xbf16>,
    %cst_3 = arith.constant 0.000000e+00 : bf16
    %4 = vector.broadcast %cst_3 : bf16 to vector<1x128xbf16>
    %c0_4 = arith.constant 0 : index
    %c0_5 = arith.constant 0 : index
    %5 = vector.load %arg11[%c0_4, %c0_5] : memref<18x128xbf16, #tpu.memory_space<vmem>>, vector<1x128xbf16>
    tpu.vector_store %arg11[%c0_4, %c0_5], %4 {strides = array<i32>} : memref<18x128xbf16, #tpu.memory_space<vmem>>, vector<1x128xbf16>,
    %cst_6 = arith.constant 0.000000e+00 : bf16
    %6 = vector.broadcast %cst_6 : bf16 to vector<1x128xbf16>
    %c17_7 = arith.constant 17 : index
    %c0_8 = arith.constant 0 : index
    %7 = vector.load %arg11[%c17_7, %c0_8] : memref<18x128xbf16, #tpu.memory_space<vmem>>, vector<1x128xbf16>
    tpu.vector_store %arg11[%c17_7, %c0_8], %6 {strides = array<i32>} : memref<18x128xbf16, #tpu.memory_space<vmem>>, vector<1x128xbf16>,
    %c0_9 = arith.constant 0 : index
    %c0_10 = arith.constant 0 : index
    %c0_11 = arith.constant 0 : index
    %8 = vector.load %arg1[%c0_9, %c0_10, %c0_11] : memref<1x16x64xbf16, #tpu.memory_space<vmem>>, vector<1x16x64xbf16>
    %9 = vector.shape_cast %8 : vector<1x16x64xbf16> to vector<16x64xbf16>
    %c1 = arith.constant 1 : index
    %c0_12 = arith.constant 0 : index
    %10 = vector.load %arg10[%c1, %c0_12] : memref<18x64xbf16, #tpu.memory_space<vmem>>, vector<16x64xbf16>
    tpu.vector_store %arg10[%c1, %c0_12], %9 {strides = array<i32>} : memref<18x64xbf16, #tpu.memory_space<vmem>>, vector<16x64xbf16>,
    %c0_13 = arith.constant 0 : index
    %c0_14 = arith.constant 0 : index
    %11 = vector.load %arg10[%c0_13, %c0_14] : memref<18x64xbf16, #tpu.memory_space<vmem>>, vector<16x64xbf16>
    %c0_15 = arith.constant 0 : index
    %c0_16 = arith.constant 0 : index
    %c0_17 = arith.constant 0 : index
    %12 = vector.load %arg2[%c0_15, %c0_16, %c0_17] : memref<3x64x192xbf16, #tpu.memory_space<vmem>>, vector<1x64x192xbf16>
    %13 = vector.shape_cast %12 : vector<1x64x192xbf16> to vector<64x192xbf16>
    %cst_18 = arith.constant dense<0.000000e+00> : vector<16x192xf32>
    %14 = tpu.matmul %11, %13, %cst_18 {dimension_numbers = #tpu.dot_dimension_numbers<[1], [0], [0], [1], [0, 0, 1, 1], [], []>} : vector<16x64xbf16>, vector<64x192xbf16>, vector<16x192xf32> -> vector<16x192xf32>
    %c0_19 = arith.constant 0 : index
    %c0_20 = arith.constant 0 : index
    %15 = vector.load %arg3[%c0_19, %c0_20] : memref<1x192xf32, #tpu.memory_space<vmem>>, vector<1x192xf32>
    %16 = vector.broadcast %15 : vector<1x192xf32> to vector<16x192xf32>
    %17 = arith.addf %14, %16 : vector<16x192xf32>
    %c1_21 = arith.constant 1 : index
    %c0_22 = arith.constant 0 : index
    %18 = vector.load %arg10[%c1_21, %c0_22] : memref<18x64xbf16, #tpu.memory_space<vmem>>, vector<16x64xbf16>
    %c1_23 = arith.constant 1 : index
    %c0_24 = arith.constant 0 : index
    %c0_25 = arith.constant 0 : index
    %19 = vector.load %arg2[%c1_23, %c0_24, %c0_25] : memref<3x64x192xbf16, #tpu.memory_space<vmem>>, vector<1x64x192xbf16>
    %20 = vector.shape_cast %19 : vector<1x64x192xbf16> to vector<64x192xbf16>
    %cst_26 = arith.constant dense<0.000000e+00> : vector<16x192xf32>
    %21 = tpu.matmul %18, %20, %cst_26 {dimension_numbers = #tpu.dot_dimension_numbers<[1], [0], [0], [1], [0, 0, 1, 1], [], []>} : vector<16x64xbf16>, vector<64x192xbf16>, vector<16x192xf32> -> vector<16x192xf32>
    %22 = arith.addf %17, %21 : vector<16x192xf32>
    %c2 = arith.constant 2 : index
    %c0_27 = arith.constant 0 : index
    %23 = vector.load %arg10[%c2, %c0_27] : memref<18x64xbf16, #tpu.memory_space<vmem>>, vector<16x64xbf16>
    %c2_28 = arith.constant 2 : index
    %c0_29 = arith.constant 0 : index
    %c0_30 = arith.constant 0 : index
    %24 = vector.load %arg2[%c2_28, %c0_29, %c0_30] : memref<3x64x192xbf16, #tpu.memory_space<vmem>>, vector<1x64x192xbf16>
    %25 = vector.shape_cast %24 : vector<1x64x192xbf16> to vector<64x192xbf16>
    %cst_31 = arith.constant dense<0.000000e+00> : vector<16x192xf32>
    %26 = tpu.matmul %23, %25, %cst_31 {dimension_numbers = #tpu.dot_dimension_numbers<[1], [0], [0], [1], [0, 0, 1, 1], [], []>} : vector<16x64xbf16>, vector<64x192xbf16>, vector<16x192xf32> -> vector<16x192xf32>
    %27 = arith.addf %22, %26 : vector<16x192xf32>
    %28 = vector.extract_strided_slice %27 {offsets = [0, 0], sizes = [16, 128], strides = [1, 1]} : vector<16x192xf32> to vector<16x128xf32>
    %29 = vector.extract_strided_slice %27 {offsets = [0, 128], sizes = [16, 64], strides = [1, 1]} : vector<16x192xf32> to vector<16x64xf32>
    %cst_32 = arith.constant 0.000000e+00 : f32
    %30 = vector.broadcast %cst_32 : f32 to vector<16x64xf32>
    %31 = arith.cmpf ogt, %29, %30 : vector<16x64xf32>
    %cst_33 = arith.constant 2.000000e-01 : f32
    %32 = vector.broadcast %cst_33 : f32 to vector<16x64xf32>
    %33 = arith.mulf %32, %29 : vector<16x64xf32>
    %34 = arith.select %31, %29, %33 : vector<16x64xi1>, vector<16x64xf32>
    %35 = arith.truncf %34 : vector<16x64xf32> to vector<16x64xbf16>
    %c1_34 = arith.constant 1 : index
    %c0_35 = arith.constant 0 : index
    %36 = vector.load %arg10[%c1_34, %c0_35] : memref<18x64xbf16, #tpu.memory_space<vmem>>, vector<16x64xbf16>
    tpu.vector_store %arg10[%c1_34, %c0_35], %35 {strides = array<i32>} : memref<18x64xbf16, #tpu.memory_space<vmem>>, vector<16x64xbf16>,
    %c0_36 = arith.constant 0 : index
    %c0_37 = arith.constant 0 : index
    %37 = vector.load %arg10[%c0_36, %c0_37] : memref<18x64xbf16, #tpu.memory_space<vmem>>, vector<16x64xbf16>
    %c0_38 = arith.constant 0 : index
    %c0_39 = arith.constant 0 : index
    %c0_40 = arith.constant 0 : index
    %38 = vector.load %arg4[%c0_38, %c0_39, %c0_40] : memref<3x64x128xbf16, #tpu.memory_space<vmem>>, vector<1x64x128xbf16>
    %39 = vector.shape_cast %38 : vector<1x64x128xbf16> to vector<64x128xbf16>
    %cst_41 = arith.constant dense<0.000000e+00> : vector<16x128xf32>
    %40 = tpu.matmul %37, %39, %cst_41 {dimension_numbers = #tpu.dot_dimension_numbers<[1], [0], [0], [1], [0, 0, 1, 1], [], []>} : vector<16x64xbf16>, vector<64x128xbf16>, vector<16x128xf32> -> vector<16x128xf32>
    %c0_42 = arith.constant 0 : index
    %c0_43 = arith.constant 0 : index
    %41 = vector.load %arg5[%c0_42, %c0_43] : memref<1x128xf32, #tpu.memory_space<vmem>>, vector<1x128xf32>
    %42 = vector.broadcast %41 : vector<1x128xf32> to vector<16x128xf32>
    %43 = arith.addf %40, %42 : vector<16x128xf32>
    %c1_44 = arith.constant 1 : index
    %c0_45 = arith.constant 0 : index
    %44 = vector.load %arg10[%c1_44, %c0_45] : memref<18x64xbf16, #tpu.memory_space<vmem>>, vector<16x64xbf16>
    %c1_46 = arith.constant 1 : index
    %c0_47 = arith.constant 0 : index
    %c0_48 = arith.constant 0 : index
    %45 = vector.load %arg4[%c1_46, %c0_47, %c0_48] : memref<3x64x128xbf16, #tpu.memory_space<vmem>>, vector<1x64x128xbf16>
    %46 = vector.shape_cast %45 : vector<1x64x128xbf16> to vector<64x128xbf16>
    %cst_49 = arith.constant dense<0.000000e+00> : vector<16x128xf32>
    %47 = tpu.matmul %44, %46, %cst_49 {dimension_numbers = #tpu.dot_dimension_numbers<[1], [0], [0], [1], [0, 0, 1, 1], [], []>} : vector<16x64xbf16>, vector<64x128xbf16>, vector<16x128xf32> -> vector<16x128xf32>
    %48 = arith.addf %43, %47 : vector<16x128xf32>
    %c2_50 = arith.constant 2 : index
    %c0_51 = arith.constant 0 : index
    %49 = vector.load %arg10[%c2_50, %c0_51] : memref<18x64xbf16, #tpu.memory_space<vmem>>, vector<16x64xbf16>
    %c2_52 = arith.constant 2 : index
    %c0_53 = arith.constant 0 : index
    %c0_54 = arith.constant 0 : index
    %50 = vector.load %arg4[%c2_52, %c0_53, %c0_54] : memref<3x64x128xbf16, #tpu.memory_space<vmem>>, vector<1x64x128xbf16>
    %51 = vector.shape_cast %50 : vector<1x64x128xbf16> to vector<64x128xbf16>
    %cst_55 = arith.constant dense<0.000000e+00> : vector<16x128xf32>
    %52 = tpu.matmul %49, %51, %cst_55 {dimension_numbers = #tpu.dot_dimension_numbers<[1], [0], [0], [1], [0, 0, 1, 1], [], []>} : vector<16x64xbf16>, vector<64x128xbf16>, vector<16x128xf32> -> vector<16x128xf32>
    %53 = arith.addf %48, %52 : vector<16x128xf32>
    %cst_56 = arith.constant 0.000000e+00 : f32
    %54 = vector.broadcast %cst_56 : f32 to vector<16x128xf32>
    %55 = arith.cmpf ogt, %53, %54 : vector<16x128xf32>
    %cst_57 = arith.constant 2.000000e-01 : f32
    %56 = vector.broadcast %cst_57 : f32 to vector<16x128xf32>
    %57 = arith.mulf %56, %53 : vector<16x128xf32>
    %58 = arith.select %55, %53, %57 : vector<16x128xi1>, vector<16x128xf32>
    %59 = arith.addf %58, %28 : vector<16x128xf32>
    %c0_58 = arith.constant 0 : index
    %c0_59 = arith.constant 0 : index
    %c0_60 = arith.constant 0 : index
    %60 = vector.load %arg8[%c0_58, %c0_59, %c0_60] : memref<1x16x128xf32, #tpu.memory_space<vmem>>, vector<1x16x128xf32>
    %61 = vector.shape_cast %60 : vector<1x16x128xf32> to vector<16x128xf32>
    %62 = vector.shape_cast %59 : vector<16x128xf32> to vector<1x16x128xf32>
    tpu.vector_store %arg8[%c0_58, %c0_59, %c0_60], %62 {strides = array<i32>} : memref<1x16x128xf32, #tpu.memory_space<vmem>>, vector<1x16x128xf32>,
    %63 = arith.truncf %59 : vector<16x128xf32> to vector<16x128xbf16>
    %c1_61 = arith.constant 1 : index
    %c0_62 = arith.constant 0 : index
    %64 = vector.load %arg11[%c1_61, %c0_62] : memref<18x128xbf16, #tpu.memory_space<vmem>>, vector<16x128xbf16>
    tpu.vector_store %arg11[%c1_61, %c0_62], %63 {strides = array<i32>} : memref<18x128xbf16, #tpu.memory_space<vmem>>, vector<16x128xbf16>,
    %c0_63 = arith.constant 0 : index
    %c0_64 = arith.constant 0 : index
    %65 = vector.load %arg6[%c0_63, %c0_64] : memref<24x18xbf16, #tpu.memory_space<vmem>>, vector<24x18xbf16>
    %c0_65 = arith.constant 0 : index
    %c0_66 = arith.constant 0 : index
    %66 = vector.load %arg11[%c0_65, %c0_66] : memref<18x128xbf16, #tpu.memory_space<vmem>>, vector<18x128xbf16>
    %cst_67 = arith.constant dense<0.000000e+00> : vector<24x128xf32>
    %67 = tpu.matmul %65, %66, %cst_67 {dimension_numbers = #tpu.dot_dimension_numbers<[1], [0], [0], [1], [0, 0, 1, 1], [], []>} : vector<24x18xbf16>, vector<18x128xbf16>, vector<24x128xf32> -> vector<24x128xf32>
    %68 = arith.truncf %67 : vector<24x128xf32> to vector<24x128xbf16>
    %69 = vector.extract_strided_slice %68 {offsets = [0, 0], sizes = [4, 128], strides = [1, 1]} : vector<24x128xbf16> to vector<4x128xbf16>
    %c0_68 = arith.constant 0 : index
    %c0_69 = arith.constant 0 : index
    %c0_70 = arith.constant 0 : index
    %70 = vector.load %arg7[%c0_68, %c0_69, %c0_70] : memref<6x128x128xbf16, #tpu.memory_space<vmem>>, vector<1x128x128xbf16>
    %71 = vector.shape_cast %70 : vector<1x128x128xbf16> to vector<128x128xbf16>
    %cst_71 = arith.constant dense<0.000000e+00> : vector<4x128xf32>
    %72 = tpu.matmul %69, %71, %cst_71 {dimension_numbers = #tpu.dot_dimension_numbers<[1], [0], [0], [1], [0, 0, 1, 1], [], []>} : vector<4x128xbf16>, vector<128x128xbf16>, vector<4x128xf32> -> vector<4x128xf32>
    %73 = vector.extract_strided_slice %68 {offsets = [4, 0], sizes = [4, 128], strides = [1, 1]} : vector<24x128xbf16> to vector<4x128xbf16>
    %c1_72 = arith.constant 1 : index
    %c0_73 = arith.constant 0 : index
    %c0_74 = arith.constant 0 : index
    %74 = vector.load %arg7[%c1_72, %c0_73, %c0_74] : memref<6x128x128xbf16, #tpu.memory_space<vmem>>, vector<1x128x128xbf16>
    %75 = vector.shape_cast %74 : vector<1x128x128xbf16> to vector<128x128xbf16>
    %cst_75 = arith.constant dense<0.000000e+00> : vector<4x128xf32>
    %76 = tpu.matmul %73, %75, %cst_75 {dimension_numbers = #tpu.dot_dimension_numbers<[1], [0], [0], [1], [0, 0, 1, 1], [], []>} : vector<4x128xbf16>, vector<128x128xbf16>, vector<4x128xf32> -> vector<4x128xf32>
    %77 = arith.addf %72, %76 : vector<4x128xf32>
    %78 = vector.extract_strided_slice %68 {offsets = [8, 0], sizes = [4, 128], strides = [1, 1]} : vector<24x128xbf16> to vector<4x128xbf16>
    %c2_76 = arith.constant 2 : index
    %c0_77 = arith.constant 0 : index
    %c0_78 = arith.constant 0 : index
    %79 = vector.load %arg7[%c2_76, %c0_77, %c0_78] : memref<6x128x128xbf16, #tpu.memory_space<vmem>>, vector<1x128x128xbf16>
    %80 = vector.shape_cast %79 : vector<1x128x128xbf16> to vector<128x128xbf16>
    %cst_79 = arith.constant dense<0.000000e+00> : vector<4x128xf32>
    %81 = tpu.matmul %78, %80, %cst_79 {dimension_numbers = #tpu.dot_dimension_numbers<[1], [0], [0], [1], [0, 0, 1, 1], [], []>} : vector<4x128xbf16>, vector<128x128xbf16>, vector<4x128xf32> -> vector<4x128xf32>
    %82 = arith.addf %77, %81 : vector<4x128xf32>
    %83 = vector.extract_strided_slice %68 {offsets = [12, 0], sizes = [4, 128], strides = [1, 1]} : vector<24x128xbf16> to vector<4x128xbf16>
    %c3 = arith.constant 3 : index
    %c0_80 = arith.constant 0 : index
    %c0_81 = arith.constant 0 : index
    %84 = vector.load %arg7[%c3, %c0_80, %c0_81] : memref<6x128x128xbf16, #tpu.memory_space<vmem>>, vector<1x128x128xbf16>
    %85 = vector.shape_cast %84 : vector<1x128x128xbf16> to vector<128x128xbf16>
    %cst_82 = arith.constant dense<0.000000e+00> : vector<4x128xf32>
    %86 = tpu.matmul %83, %85, %cst_82 {dimension_numbers = #tpu.dot_dimension_numbers<[1], [0], [0], [1], [0, 0, 1, 1], [], []>} : vector<4x128xbf16>, vector<128x128xbf16>, vector<4x128xf32> -> vector<4x128xf32>
    %87 = arith.addf %82, %86 : vector<4x128xf32>
    %88 = vector.extract_strided_slice %68 {offsets = [16, 0], sizes = [4, 128], strides = [1, 1]} : vector<24x128xbf16> to vector<4x128xbf16>
    %c4 = arith.constant 4 : index
    %c0_83 = arith.constant 0 : index
    %c0_84 = arith.constant 0 : index
    %89 = vector.load %arg7[%c4, %c0_83, %c0_84] : memref<6x128x128xbf16, #tpu.memory_space<vmem>>, vector<1x128x128xbf16>
    %90 = vector.shape_cast %89 : vector<1x128x128xbf16> to vector<128x128xbf16>
    %cst_85 = arith.constant dense<0.000000e+00> : vector<4x128xf32>
    %91 = tpu.matmul %88, %90, %cst_85 {dimension_numbers = #tpu.dot_dimension_numbers<[1], [0], [0], [1], [0, 0, 1, 1], [], []>} : vector<4x128xbf16>, vector<128x128xbf16>, vector<4x128xf32> -> vector<4x128xf32>
    %92 = arith.addf %87, %91 : vector<4x128xf32>
    %93 = vector.extract_strided_slice %68 {offsets = [20, 0], sizes = [4, 128], strides = [1, 1]} : vector<24x128xbf16> to vector<4x128xbf16>
    %c5 = arith.constant 5 : index
    %c0_86 = arith.constant 0 : index
    %c0_87 = arith.constant 0 : index
    %94 = vector.load %arg7[%c5, %c0_86, %c0_87] : memref<6x128x128xbf16, #tpu.memory_space<vmem>>, vector<1x128x128xbf16>
    %95 = vector.shape_cast %94 : vector<1x128x128xbf16> to vector<128x128xbf16>
    %cst_88 = arith.constant dense<0.000000e+00> : vector<4x128xf32>
    %96 = tpu.matmul %93, %95, %cst_88 {dimension_numbers = #tpu.dot_dimension_numbers<[1], [0], [0], [1], [0, 0, 1, 1], [], []>} : vector<4x128xbf16>, vector<128x128xbf16>, vector<4x128xf32> -> vector<4x128xf32>
    %97 = arith.addf %92, %96 : vector<4x128xf32>
    %c0_89 = arith.constant 0 : index
    %c0_90 = arith.constant 0 : index
    %c0_91 = arith.constant 0 : index
    %98 = vector.load %arg9[%c0_89, %c0_90, %c0_91] : memref<1x4x128xf32, #tpu.memory_space<vmem>>, vector<1x4x128xf32>
    %99 = vector.shape_cast %98 : vector<1x4x128xf32> to vector<4x128xf32>
    %100 = vector.shape_cast %97 : vector<4x128xf32> to vector<1x4x128xf32>
    tpu.vector_store %arg9[%c0_89, %c0_90, %c0_91], %100 {strides = array<i32>} : memref<1x4x128xf32, #tpu.memory_space<vmem>>, vector<1x4x128xf32>,
    return
  }
  func.func @transform_0(%arg0: i32) -> (i32, i32, i32) {
    %c0_i32 = arith.constant 0 : i32
    %c0_i32_0 = arith.constant 0 : i32
    %c0_i32_1 = arith.constant 0 : i32
    return %arg0, %c0_i32, %c0_i32_0 : i32, i32, i32
  }
  func.func @transform_1(%arg0: i32) -> (i32, i32, i32) {
    %c0_i32 = arith.constant 0 : i32
    %c0_i32_0 = arith.constant 0 : i32
    %c0_i32_1 = arith.constant 0 : i32
    %c0_i32_2 = arith.constant 0 : i32
    return %c0_i32, %c0_i32_0, %c0_i32_1 : i32, i32, i32
  }
  func.func @transform_2(%arg0: i32) -> (i32, i32) {
    %c0_i32 = arith.constant 0 : i32
    %c0_i32_0 = arith.constant 0 : i32
    %c0_i32_1 = arith.constant 0 : i32
    return %c0_i32, %c0_i32_0 : i32, i32
  }
  func.func @transform_3(%arg0: i32) -> (i32, i32, i32) {
    %c0_i32 = arith.constant 0 : i32
    %c0_i32_0 = arith.constant 0 : i32
    %c0_i32_1 = arith.constant 0 : i32
    %c0_i32_2 = arith.constant 0 : i32
    return %c0_i32, %c0_i32_0, %c0_i32_1 : i32, i32, i32
  }
  func.func @transform_4(%arg0: i32) -> (i32, i32) {
    %c0_i32 = arith.constant 0 : i32
    %c0_i32_0 = arith.constant 0 : i32
    %c0_i32_1 = arith.constant 0 : i32
    return %c0_i32, %c0_i32_0 : i32, i32
  }
  func.func @transform_5(%arg0: i32) -> (i32, i32) {
    %c0_i32 = arith.constant 0 : i32
    %c0_i32_0 = arith.constant 0 : i32
    %c0_i32_1 = arith.constant 0 : i32
    return %c0_i32, %c0_i32_0 : i32, i32
  }
  func.func @transform_6(%arg0: i32) -> (i32, i32, i32) {
    %c0_i32 = arith.constant 0 : i32
    %c0_i32_0 = arith.constant 0 : i32
    %c0_i32_1 = arith.constant 0 : i32
    %c0_i32_2 = arith.constant 0 : i32
    return %c0_i32, %c0_i32_0, %c0_i32_1 : i32, i32, i32
  }
  func.func @transform_7(%arg0: i32) -> (i32, i32, i32) {
    %c0_i32 = arith.constant 0 : i32
    %c0_i32_0 = arith.constant 0 : i32
    %c0_i32_1 = arith.constant 0 : i32
    return %arg0, %c0_i32, %c0_i32_0 : i32, i32, i32
  }
  func.func @transform_8(%arg0: i32) -> (i32, i32, i32) {
    %c0_i32 = arith.constant 0 : i32
    %c0_i32_0 = arith.constant 0 : i32
    %c0_i32_1 = arith.constant 0 : i32
    return %arg0, %c0_i32, %c0_i32_0 : i32, i32, i32
  }
}

</mosaic_0001>

<bundles_post_ra>
// kernel: tpu_custom_call.1
= control target key start
LH: loop header
LB: loop body
LE: loop exit
PB: predicated region body
PF: predicated region fallthrough
CT: control target
= control target key end

     0   :  { %s3000_s0 = inlined_call_operand.hbm [shape: bf16[2,16,64], index: 0, kind: input, shape index: {}]   ;;  %s3001_s1 = inlined_call_operand.hbm [shape: bf16[3,64,192], index: 1, kind: input, shape index: {}]   ;;  %s3002_s2 = inlined_call_operand.hbm [shape: f32[1,192], index: 2, kind: input, shape index: {}]   ;;  %s3003_s3 = inlined_call_operand.hbm [shape: bf16[3,64,128], index: 3, kind: input, shape index: {}]   ;;  %s3004_s4 = inlined_call_operand.vmem [shape: f32[1,128], index: 4, kind: input, shape index: {}]   ;;  %s3005_s5 = inlined_call_operand.hbm [shape: bf16[24,18], index: 5, kind: input, shape index: {}]   ;;  %s3006_s6 = inlined_call_operand.hbm [shape: bf16[6,128,128], index: 6, kind: input, shape index: {}]   ;;  %s3007_s7 = inlined_call_operand.hbm [shape: f32[2,16,128], index: 7, kind: output, shape index: {0}]   ;;  %s3008_s8 = inlined_call_operand.hbm [shape: f32[2,4,128], index: 8, kind: output, shape index: {1}]  }
   0x1   :  { %3011 = sst [smem:[#allocation24_spill]] %s3000_s0 }
   0x2   :  { %3012 = sst [smem:[#allocation25_spill]] %s3001_s1 }
   0x3   :  { %3013 = sst [smem:[#allocation26_spill]] %s3002_s2 }
   0x4   :  { %14 = vsyncpa [#allocation5], 0 }
   0x5   :  { %16 = vsyncpa [#allocation5 + $0x1], 0 }
   0x6   :  { %17 = vsyncpa [#allocation8], 0 }
   0x7   :  { %18 = vsyncpa [#allocation11], 0 }
   0x8   :  { %19 = vsyncpa [#allocation14], 0 }
   0x9   :  { %20 = vsyncpa [#allocation6], 0 }
   0xa   :  { %22 = vsyncpa [#allocation6 + $0x1], 0 }
   0xb   :  { %23 = vsyncpa [#allocation17], 0 }
   0xc   :  { %25 = vsyncpa [#allocation17 + $0x1], 0  ;;  %s2710_s27 = smov 0   ;;  %s2712_s28 = smov 0  }
   0xd   :  { %s2714_s29 = smov 0   ;;  %s2716_s30 = smov 0  }
   0xe LB: > { %s3014_s1 = sld [smem:[#allocation25_spill]]  ;;  %s2734_s12 = sadd.s32 4294967295, %s2652_s30   ;;  %s2652_s30 = sphi %s2716_s30, %s3039_s30   ;;  %s2648_s29 = sphi %s2714_s29, %s3038_s29   ;;  %s2644_s28 = sphi %s2712_s28, %s3037_s28   ;;  %s2640_s27 = sphi %s2710_s27, %s3036_s27  }
   0xf   : > { %p1767_p0 = scmp.ge.s32.totalorder %s2652_s30, 1  ;;  %p52_p1 = scmp.eq.s32.totalorder %s2734_s12, 0 }
  0x10   : > { %p240_p2 = scmp.lt.s32.totalorder %s2652_s30, 3  ;;  %s2654_s14 = smov [#allocation7]  }
  0x11   : > { %s253_s15 = sshll.u32 %s2654_s14, 4  ;;  %s277_s18 = sshll.u32 %s3003_s3, 4  ;;  %s254_s15 = int_to_ptr.vmem [resolvable:$true] %s253_s15  ;;  %s278_s18 = int_to_ptr.hbm [resolvable:$true] %s277_s18 }
  0x12   : > { %p2739_p3 = pnand %p1767_p0, %p240_p2  ;;  %s2655_s20 = smov [#allocation10]  }
  0x13   : > { %s279_s21 = sshll.u32 %s2655_s20, 4  ;;  %s2656_s22 = smov 128   ;;  %s280_s21 = int_to_ptr.vmem [resolvable:$true] %s279_s21 }
  0x14   : > { %s251_s11 = sshll.u32 %s3014_s1, 4  ;;  %p2279_p4 = pneg %p2739_p3  ;;  %s252_s11 = int_to_ptr.hbm [resolvable:$true] %s251_s11 }
  0x15   : > { %s2657_s23 = smov 8   ;;  %s3009_s24 = smov 64  }
  0x16   : > { %p2751_p6 = pnand %p2279_p4, %p52_p1  ;;  %s3010_s25 = smov 4  }
  0x17   : > { %s3017_s2 = sld [smem:[#allocation26_spill]]  ;;  %s2660_s14 = smov [#allocation9]  }
  0x18   : > { %2282 = dma.hbm_to_vmem [thread:$0]  (!%p2751_p6), %s252_s11, 3072, %s254_s15, [#allocation8], %s2656_s22, %s2656_s22, %s2657_s23  }
  0x19   : > { %2288 = dma.hbm_to_vmem [thread:$0]  (!%p2751_p6), %s278_s18, 1536, %s280_s21, [#allocation11], %s3009_s24, %s3009_s24, %s3010_s25  }
  0x1a   : > { %s268_s16 = sshll.u32 %s2660_s14, 4  ;;  %s294_s17 = sshll.u32 %s3005_s5, 4  ;;  %s269_s16 = int_to_ptr.vmem [resolvable:$true] %s268_s16  ;;  %s295_s17 = int_to_ptr.hbm [resolvable:$true] %s294_s17 }
  0x1b   : > { %s2661_s18 = smov [#allocation12]   ;;  %s308_s23 = sshll.u32 %s3006_s6, 4  ;;  %s309_s23 = int_to_ptr.hbm [resolvable:$true] %s308_s23 }
  0x1c   : > { %s296_s20 = sshll.u32 %s2661_s18, 4  ;;  %s2662_s26 = smov [#allocation13]   ;;  %s297_s20 = int_to_ptr.vmem [resolvable:$true] %s296_s20 }
  0x1d   : > { %s266_s10 = sshll.u32 %s3017_s2, 4  ;;  %s310_s9 = sshll.u32 %s2662_s26, 4  ;;  %s267_s10 = int_to_ptr.hbm [resolvable:$true] %s266_s10  ;;  %s311_s9 = int_to_ptr.vmem [resolvable:$true] %s310_s9 }
  0x1e   : > { %2285 = dma.hbm_to_vmem [thread:$0]  (!%p2751_p6), %s267_s10, 32, %s269_s16, [#allocation8]  }
  0x1f   : > { %2291 = dma.hbm_to_vmem [thread:$0]  (!%p2751_p6), %s295_s17, 192, %s297_s20, [#allocation11], %s3009_s24, %s3009_s24, %s3010_s25  }
  0x20   : > { %2294 = dma.hbm_to_vmem [thread:$0]  (!%p2751_p6), %s309_s23, 6144, %s311_s9, [#allocation14], %s3009_s24, %s3009_s24, %s3010_s25  }
  0x21   : > { %s1766_s10 = sadd.s32 4294967294, %s2652_s30   ;;  %s2785_s14 = sadd.s32 1, %s2652_s30  }
  0x22   : > { %s38_s16 = sadd.s32 1, %s2648_s29  ;;  %s35_s11 = ssub.s32 %s2652_s30, %s2785_s14 }
  0x23   : > { %p45_p7 = scmp.ne.s32.totalorder %s2648_s29, %s2644_s28  ;;  %p36_p8 = scmp.eq.s32.totalorder %s35_s11, 0 }
  0x24   : > { %p46_p9 = scmp.eq.s32.totalorder %s2652_s30, 0  ;;  %p51_p10 = scmp.ne.s32.totalorder %s2644_s28, %s2640_s27 }
  0x25   : > { %p201_p11 = scmp.eq.s32.totalorder %s2734_s12, 1  ;;  %p207_p0 = scmp.eq.s32.totalorder %s1766_s10, 1 }
  0x26   : > { %s2797_s15 = scalar_select %p36_p8, %s2648_s29, %s38_s16  }
  0x27   : > { %p2801_p12 = por %p52_p1, %p51_p10  ;;  %p2805_p13 = por %p201_p11, %p45_p7 }
  0x28   : > { %p47_p2 = por %p46_p9, %p45_p7  ;;  %s324_s18 = sand.u32 1, %s2648_s29  }
  0x29   : > { %p2810_p4 = por %p207_p0, %p51_p10  ;;  %p2311_p6 = scmp.lt.s32.totalorder %s2652_s30, 2 }
  0x2a   : > { %s1774_s21 = sshll.u32 %s324_s18, 3  ;;  %s2156_s22 = sshll.u32 %s2652_s30, 3 }
  0x2b   : > { %s3021_s0 = sld [smem:[#allocation24_spill]]  ;;  %s328_s11 = scalar_lea.vmem [#allocation4], %s1774_s21 }
  0x2c   : > { %s336_s24 = sshll.u32 %s328_s11, 4  ;;  %p2819_p8 = pnand %p2311_p6, %p47_p2  ;;  %s337_s24 = int_to_ptr.vmem [resolvable:$true] %s336_s24 }
  0x2d   : > { %s325_s25 = scalar_lea.sflag [#allocation5], %s324_s18 }
  0x2e   : > { %p2516_p9 = pneg %p2819_p8 }
  0x31   : > { %s333_s9 = scalar_lea.hbm %s3021_s0, %s2156_s22  ;;  %s2519_s21 = scalar_lea.hbm %s3021_s0, 16 }
  0x32   : > { %s334_s16 = sshll.u32 %s333_s9, 4  ;;  %s335_s16 = int_to_ptr.hbm [resolvable:$true] %s334_s16 }
  0x33   : > { %s2512_s1 = sshra.s32 %s335_s16, 4  ;;  %s2513_s1 = int_to_ptr.hbm [resolvable:$true] %s2512_s1 }
  0x34   : > { %s2514_s2 = scalar_lea.hbm %s2513_s1, 8  ;;  %p2520_p0 = scmp.lt.s32.totalorder %s2513_s1, %s3021_s0 }
  0x35   : > { %p2515_p7 = scmp.ne.s32.totalorder %s2513_s1, %s2514_s2  ;;  %p2521_p2 = scmp.lt.s32.totalorder %s2519_s21, %s2514_s2 }
  0x37   : > { %p2517_p10 = pnand %p2516_p9, %p2515_p7  ;;  %p2522_p6 = por %p2521_p2, %p2520_p0 }
  0x39   : > { %p2518_p11 = pneg %p2517_p10 }
  0x3b   : > { %p2523_p5 = pnand %p2522_p6, %p2518_p11 }
  0x3d   : > { %2526 = shalt.err (!%p2523_p5)
}
  0x3e   : > { %s3023_s18 = smov 4   ;;  %s3024_s11 = smov 64  }
  0x3f   : > { %2298 = dma.hbm_to_vmem [thread:$0]  (!%p2819_p8), %s335_s16, 128, %s337_s24, %s325_s25, %s3024_s11, %s3024_s11, %s3023_s18  }
  0x40   : > { %348 = sbr.rel (%p2739_p3) target bundleno = 755 (0x2f3), region = 48  ;;  %s2839_s22 = sand.u32 (!%p2739_p3), 1, %s2644_s28  }
  0x41   : > { %s1778_s1 = sshll.u32 (!%p2739_p3), %s2839_s22, 3  ;;  %s351_s2 = scalar_lea.sflag (!%p2739_p3), [#allocation5], %s2839_s22 }
  0x42   : > { %s2843_s23 = scalar_lea.vmem (!%p2739_p3), [#allocation4], %s1778_s1 }
  0x45   : > { %2615 = dma.done.wait (%p2801_p12), %s351_s2, 128  }
  0x46   : > { %2617 = vsyncadd (%p2801_p12), %s351_s2, 4294967168 }
  0x47   : > { %2619 = dma.done.wait (%p52_p1), [#allocation8], 3104  }
  0x48   : > { %2621 = vsyncadd (%p52_p1), [#allocation8], 4294964192 }
  0x49   : > { %2623 = dma.done.wait (%p52_p1), [#allocation11], 1728  }
  0x4a   : > { %2625 = vsyncadd (%p52_p1), [#allocation11], 4294965568 }
  0x4b   : > { %2627 = dma.done.wait (%p52_p1), [#allocation14], 6144  }
  0x4c   : > { %2629 = vsyncadd (%p52_p1), [#allocation14], 4294961152  ;;  %vm419_vm0 = vcmask 516096   ;;  %vm420_vm1 = vsmask.f32 256  ;;  %vm463_vm6 = vcmask 519168  }
  0x4d   : > { %vm425_vm2 = vsmask.f32 7938  ;;  %vm2862_vm3 = vmand %vm419_vm0, %vm420_vm1  ;;  %v2164_v1 = vld [vmem:[#allocation7 + $0x34] sm:$0xf]  ;;  %v1818_v2 = vld [vmem:[#allocation7 + $0x38] sm:$0xf0] }
  0x4e   : > { %v2162_v3 = vld [vmem:[#allocation7 + $0x24] sm:$0xf]  ;;  %v1821_v4 = vor.u32 %v2164_v1, %v1818_v2  ;;  %v1810_v5 = vld [vmem:[#allocation7 + $0x28] sm:$0xf0]  ;;  %vm2867_vm4 = vmand %vm419_vm0, %vm425_vm2  ;;  %vm441_vm5 = vsmask.f32 4368 }
  0x4f   : > { %v2160_v7 = vld [vmem:[#allocation7 + $0x14] sm:$0xf]  ;;  %v1852_v9 = vld [vmem:[#allocation7 + $0x78] sm:$0xf0]  ;;  %v1813_v10 = vor.u32 %v2162_v3, %v1810_v5  ;;  %v2170_v13 = vld [vmem:[#allocation7 + $0x64] sm:$0xf] }
  0x50   : > { %v2172_v8 = vld [vmem:[#allocation7 + $0x74] sm:$0xf]  ;;  %556 = vmatpush.bf16.msra.mxu1 %v1821_v4  ;;  %v1802_v11 = vld [vmem:[#allocation7 + $0x18] sm:$0xf0]  ;;  %v1844_v14 = vld [vmem:[#allocation7 + $0x68] sm:$0xf0] }
  0x51   : > { %v1855_v12 = vor.u32 %v2172_v8, %v1852_v9  ;;  %v422_v15 = vld [vmem:[#allocation2] sm:$0x1]  ;;  %v427_v16 = vld [vmem:[#allocation2 + $0x8] sm:$0x1]  ;;  %v1847_v18 = vor.u32 %v2170_v13, %v1844_v14  ;;  %v440_v21 = vld [vmem:[%s2843_s23 + $0x4] sm:$0xf]  ;;  %v1805_v27 = vor.u32 %v2160_v7, %v1802_v11 }
  0x52   : > { %v439_v17 = vld [vmem:[%s2843_s23] sm:$0xf]  ;;  %v423_v19 = vsel %vm2862_vm3, 0, %v422_v15  ;;  %v428_v20 = vsel %vm2867_vm4, 0, %v427_v16  ;;  %v2158_v23 = vld [vmem:[#allocation7 + $0x4] sm:$0xf]  ;;  %vm2879_vm7 = vmor %vm420_vm1, %vm441_vm5 }
  0x53   : > { %660 = vmatpush.bf16.msra.mxu3 %v1855_v12  ;;  %v444_v22 = vshrl.u32 %v439_v17, 16  ;;  %424 = vst [vmem:[#allocation2] sm:$0x1] %v423_v19  ;;  %v447_v24 = vshll.u32 %v439_v17, 16  ;;  %v452_v25 = vshrl.u32 %v440_v21, 16  ;;  %v455_v26 = vshll.u32 %v440_v21, 16  ;;  %vm2885_vm8 = vmand %vm463_vm6, %vm425_vm2 }
  0x54   : > { %557 = vmatpush.bf16.msra.mxu1 %v1813_v10  ;;  %v1794_v28 = vld [vmem:[#allocation7 + $0x8] sm:$0xf0]  ;;  %429 = vst [vmem:[#allocation2 + $0x8] sm:$0x1] %v428_v20  ;;  %v2168_v31 = vld [vmem:[#allocation7 + $0x54] sm:$0xf] }
  0x55   : > { %v446_v29 = vrot.slane %v444_v22, 7  ;;  %v454_v30 = vrot.slane %v452_v25, 7  ;;  %v1836_v32 = vld [vmem:[#allocation7 + $0x58] sm:$0xf0]  ;;  %v2180_v35 = vld [vmem:[#allocation7 + $0xb4] sm:$0xf]  ;;  %v1797_v42 = vor.u32 %v2158_v23, %v1794_v28 }
  0x56   : > { %v1886_v36 = vld [vmem:[#allocation7 + $0xb8] sm:$0xf0]  ;;  %v1839_v37 = vor.u32 %v2168_v31, %v1836_v32  ;;  %v2166_v40 = vld [vmem:[#allocation7 + $0x44] sm:$0xf]  ;;  %v1828_v41 = vld [vmem:[#allocation7 + $0x48] sm:$0xf0] }
  0x57   : > { %661 = vmatpush.bf16.msra.mxu3 %v1847_v18  ;;  %v450_v34 = vrot.slane %v446_v29, 4  ;;  %v449_v38 = vor.u32 %v447_v24, %v446_v29  ;;  %v457_v39 = vor.u32 %v455_v26, %v454_v30  ;;  %v459_v43 = vrot.slane %v454_v30, 4  ;;  %v2178_v47 = vld [vmem:[#allocation7 + $0xa4] sm:$0xf]  ;;  %v1816_v48 = vld [vmem:[#allocation7 + $0x30] sm:$0xf] }
  0x58   : > { %558 = vmatpush.bf16.msra.mxu1 %v1805_v27  ;;  %v1889_v46 = vor.u32 %v2180_v35, %v1886_v36  ;;  %v2165_v49 = vld [vmem:[#allocation7 + $0x34] sm:$0xf0]  ;;  %v1878_v51 = vld [vmem:[#allocation7 + $0xa8] sm:$0xf0]  ;;  %v1831_v52 = vor.u32 %v2166_v40, %v1828_v41  ;;  %v2176_v58 = vld [vmem:[#allocation7 + $0x94] sm:$0xf] }
  0x59   : > { %v458_v45 = vsel %vm2879_vm7, %v450_v34, %v457_v39  ;;  %v1817_v53 = vor.u32 %v2165_v49, %v1816_v48  ;;  %v1881_v57 = vor.u32 %v2178_v47, %v1878_v51  ;;  %v1870_v59 = vld [vmem:[#allocation7 + $0x98] sm:$0xf0]  ;;  %vm534_vm9 = vcmask 523264   ;;  %v2174_v63 = vld [vmem:[#allocation7 + $0x84] sm:$0xf]  ;;  %s1784_s25 = sshll.u32 %s2839_s22, 4 }
  0x5a   : > { %v465_v50 = vld [vmem:[#allocation2] sm:$0xf]  ;;  %469 = vst.msk [vmem:[#allocation2 + $0x4] sm:$0xf] %vm463_vm6, %v458_v45  ;;  %v1873_v62 = vor.u32 %v2176_v58, %v1870_v59  ;;  %v1862_v1 = vld [vmem:[#allocation7 + $0x88] sm:$0xf0] }
  0x5b   : > { %662 = vmatpush.bf16.msra.mxu3 %v1839_v37  ;;  %v466_v54 = vsel %vm2885_vm8, %v449_v38, %v465_v50  ;;  %v470_v55 = vld [vmem:[#allocation2 + $0x8] sm:$0x1]  ;;  %542 = vmatpush.bf16.msra.mxu0 %v1817_v53  ;;  %v1865_v9 = vor.u32 %v2174_v63, %v1862_v1  ;;  %vm586_vm10 = vsmask.f32 7424  ;;  %vm687_vm11 = vcmask 1046528   ;;  %s2938_s19 = scalar_lea.vmem [#allocation15], %s1784_s25 }
  0x5c   : > { %559 = vmatpush.bf16.msra.mxu1 %v1797_v42  ;;  %467 = vst [vmem:[#allocation2] sm:$0xf] %v466_v54  ;;  %v471_v56 = vsel %vm2862_vm3, %v459_v43, %v470_v55  ;;  %v1808_v23 = vld [vmem:[#allocation7 + $0x20] sm:$0xf]  ;;  %v2163_v24 = vld [vmem:[#allocation7 + $0x24] sm:$0xf0] }
  0x5d   : > { %472 = vst [vmem:[#allocation2 + $0x8] sm:$0x1] %v471_v56  ;;  %v1809_v25 = vor.u32 %v2163_v24, %v1808_v23  ;;  %v1800_v26 = vld [vmem:[#allocation7 + $0x10] sm:$0xf]  ;;  %v2161_v27 = vld [vmem:[#allocation7 + $0x14] sm:$0xf0] }
  0x5e   : > { %v1850_v28 = vld [vmem:[#allocation7 + $0x70] sm:$0xf]  ;;  %v2173_v29 = vld [vmem:[#allocation7 + $0x74] sm:$0xf0]  ;;  %v1801_v30 = vor.u32 %v2161_v27, %v1800_v26  ;;  %v1792_v32 = vld [vmem:[#allocation7] sm:$0xf] }
  0x5f   : > { %663 = vmatpush.bf16.msra.mxu3 %v1831_v52  ;;  %543 = vmatpush.bf16.msra.mxu0 %v1809_v25  ;;  %v1851_v31 = vor.u32 %v2173_v29, %v1850_v28  ;;  %v2159_v34 = vld [vmem:[#allocation7 + $0x4] sm:$0xf0]  ;;  %v1842_v35 = vld [vmem:[#allocation7 + $0x60] sm:$0xf]  ;;  %v1834_v38 = vld [vmem:[#allocation7 + $0x50] sm:$0xf] }
  0x60   : > { %752 = vmatpush.bf16.msrb.mxu1 %v1889_v46  ;;  %v1793_v36 = vor.u32 %v2159_v34, %v1792_v32  ;;  %v2171_v37 = vld [vmem:[#allocation7 + $0x64] sm:$0xf0]  ;;  %v2169_v39 = vld [vmem:[#allocation7 + $0x54] sm:$0xf0]  ;;  %v1884_v41 = vld [vmem:[#allocation7 + $0xb0] sm:$0xf] }
  0x61   : > { %v567_v60 = vld [vmem:[#allocation2 + $0x4] sm:$0xf]  ;;  %646 = vmatpush.bf16.msra.mxu2 %v1851_v31  ;;  %v1843_v40 = vor.u32 %v2171_v37, %v1842_v35  ;;  %v2181_v42 = vld [vmem:[#allocation7 + $0xb4] sm:$0xf0]  ;;  %v1835_v45 = vor.u32 %v2169_v39, %v1834_v38  ;;  %v1826_v46 = vld [vmem:[#allocation7 + $0x40] sm:$0xf] }
  0x62   : > { %v582_v61 = vunpack.c.l.b16 %v567_v60  ;;  %v1885_v43 = vor.u32 %v2181_v42, %v1884_v41  ;;  %v2167_v47 = vld [vmem:[#allocation7 + $0x44] sm:$0xf0]  ;;  %v1876_v48 = vld [vmem:[#allocation7 + $0xa0] sm:$0xf]  ;;  %v1868_v52 = vld [vmem:[#allocation7 + $0x90] sm:$0xf] }
  0x63   : > { %v2157_v2 = vld [vmem:[#allocation2] sm:$0xff]  ;;  %544 = vmatpush.bf16.msra.mxu0 %v1801_v30  ;;  %v1827_v49 = vor.u32 %v2167_v47, %v1826_v46  ;;  %v2179_v50 = vld [vmem:[#allocation7 + $0xa4] sm:$0xf0]  ;;  %v1860_v55 = vld [vmem:[#allocation7 + $0x80] sm:$0xf]  ;;  %vm430_vm14 = vcmask 1040384  }
  0x64   : > { %753 = vmatpush.bf16.msrb.mxu1 %v1881_v57  ;;  %v2896_v3 = vld [vmem:[#allocation2] sm:$0xf]  ;;  %v568_v5 = vld [vmem:[#allocation2 + $0x8] sm:$0x1]  ;;  %v1877_v51 = vor.u32 %v2179_v50, %v1876_v48  ;;  %v2175_v56 = vld [vmem:[#allocation7 + $0x84] sm:$0xf0] }
  0x65   : > { %v674_v4 = vld [vmem:[#allocation2] sm:$0xe]  ;;  %v581_v6 = vunpack.c.l.b16 %v2896_v3  ;;  %1823 = vmatmul.msk.bf16.vlgmr.msra.gmra.mxu1 %vm534_vm9, %v2157_v2  ;;  %v583_v7 = vunpack.c.l.b16 %v568_v5  ;;  %647 = vmatpush.bf16.msra.mxu2 %v1843_v40  ;;  %v1861_v57 = vor.u32 %v2175_v56, %v1860_v55  ;;  %v797_v37 = vld [vmem:[#allocation2 + $0x8] sm:$0x1]  ;;  %vm2925_vm15 = vmand %vm430_vm14, %vm420_vm1  ;;  %s2245_s16 = sshll.u32 %s2734_s12, 4  ;;  %s1595_s9 = sshll.u32 %s2938_s19, 4  ;;  %s1596_s9 = int_to_ptr.vmem [resolvable:$true] %s1595_s9 }
  0x66   : > { %v685_v10 = vunpack.c.l.b16 %v674_v4  ;;  %v2177_v53 = vld [vmem:[#allocation7 + $0x94] sm:$0xf0]  ;;  %vm435_vm0 = vmand %vm430_vm14, %vm425_vm2  ;;  %s1594_s26 = scalar_lea.hbm %s3007_s7, %s2245_s16  ;;  %s1578_s11 = scalar_lea.sflag [#allocation6], %s2839_s22 }
  0x67   : > { %v584_v8 = vpack.c.b16 %v582_v61, %v581_v6  ;;  %v585_v11 = vpack.c.b16 %v583_v7, %v583_v7  ;;  %545 = vmatpush.bf16.msra.mxu0 %v1793_v36  ;;  %v1869_v54 = vor.u32 %v2177_v53, %v1868_v52  ;;  %v2186_v59 = vld [vmem:[#allocation10 + $0x18] sm:$0xff]  ;;  %v2185_v60 = vld [vmem:[#allocation10 + $0x10] sm:$0xff]  ;;  %v2183_v7 = vld [vmem:[#allocation10] sm:$0xff]  ;;  %s1597_s18 = sshll.u32 %s1594_s26, 4  ;;  %s2562_s24 = scalar_lea.hbm %s3007_s7, 32  ;;  %s1598_s18 = int_to_ptr.hbm [resolvable:$true] %s1597_s18 }
  0x68   : > { %754 = vmatpush.bf16.msrb.mxu1 %v1873_v62  ;;  %v686_v16 = vpack.c.b16 %v582_v61, %v685_v10  ;;  %v2907_v61 = vld [vmem:[#allocation9] sm:$0x3]  ;;  %v2193_v4 = vld [vmem:[#allocation10 + $0x50] sm:$0xff]  ;;  %s2556_s1 = sshra.s32 %s1598_s18, 4  ;;  %s2557_s1 = int_to_ptr.hbm [resolvable:$true] %s2556_s1 }
  0x69   : > { %v588_v12 = vshrl.u32 %v584_v8, 16  ;;  %v590_v13 = vshll.u32 %v584_v8, 16  ;;  %v595_v14 = vshll.u32 %v585_v11, 16  ;;  %v689_v21 = vrot.slane %v585_v11, 1  ;;  %648 = vmatpush.bf16.msra.mxu2 %v1835_v45  ;;  %v2194_v63 = vld [vmem:[#allocation10 + $0x58] sm:$0xff]  ;;  %v2189_v6 = vld [vmem:[#allocation10 + $0x30] sm:$0xff]  ;;  %p2563_p12 = scmp.lt.s32.totalorder %s2557_s1, %s3007_s7 }
  0x6a   : > { %v688_v20 = vrot.slane %v686_v16, 1  ;;  %1822 = vmatmul.msk.bf16.vlgmr.msra.gmra.mxu0 %vm534_vm9, %v2157_v2  ;;  %v2190_v1 = vld [vmem:[#allocation10 + $0x38] sm:$0xff]  ;;  %v2184_v2 = vld [vmem:[#allocation10 + $0x8] sm:$0xff]  ;;  %v486_v5 = vperm.slane %v2907_v61, 1  ;;  %v2187_v16 = vld [vmem:[#allocation10 + $0x20] sm:$0xff]  ;;  %s2558_s2 = scalar_lea.hbm %s2557_s1, 16 }
  0x6b   : > { %v592_v15 = vrot.slane %v590_v13, 1  ;;  %v597_v17 = vrot.slane %v595_v14, 1  ;;  %738 = vmatpush.bf16.msrb.mxu0 %v1885_v43  ;;  %923 = vmatpush.bf16.msrb.mxu3 %v2190_v1  ;;  %v2192_v8 = vld [vmem:[#allocation10 + $0x48] sm:$0xff]  ;;  %v2191_v14 = vld [vmem:[#allocation10 + $0x40] sm:$0xff]  ;;  %v2210_v33 = vld [vmem:[#allocation13 + $0x68] sm:$0xff]  ;;  %p2559_p1 = scmp.ne.s32.totalorder %s2557_s1, %s2558_s2  ;;  %p2564_p8 = scmp.lt.s32.totalorder %s2562_s24, %s2558_s2 }
  0x6c   : > { %755 = vmatpush.bf16.msrb.mxu1 %v1865_v9  ;;  %v690_v22 = vsel %vm687_vm11, %v688_v20, %v689_v21  ;;  %v2188_v13 = vld [vmem:[#allocation10 + $0x28] sm:$0xff]  ;;  %v432_v1 = vld [vmem:[#allocation3] sm:$0x1] }
  0x6d   : > { %v593_v18 = vor.u32 %v592_v15, %v588_v12  ;;  %649 = vmatpush.bf16.msra.mxu2 %v1827_v49  ;;  %p2560_p3 = pnand %p2559_p1, %p2805_p13  ;;  %p2565_p7 = por %p2564_p8, %p2563_p12 }
  0x6f   : > { %v598_v19 = vsel %vm586_vm10, %v593_v18, %v597_v17  ;;  %739 = vmatpush.bf16.msrb.mxu0 %v1877_v51  ;;  %924 = vmatpush.bf16.msrb.mxu3 %v2189_v6  ;;  %p2561_p5 = pneg %p2560_p3 }
  0x70   : > { %1857 = vmatmul.msk.bf16.vlgmr.msra.gmra.mxu3 %vm534_vm9, %v598_v19  ;;  %1856 = vmatmul.msk.bf16.vlgmr.msra.gmra.mxu2 %vm534_vm9, %v598_v19 }
  0x71   : > { %850 = vmatpush.bf16.msrb.mxu2 %v2186_v59  ;;  %p2566_p9 = pnand %p2565_p7, %p2561_p5 }
  0x73   : > { %740 = vmatpush.bf16.msrb.mxu0 %v1869_v54  ;;  %925 = vmatpush.bf16.msrb.mxu3 %v2188_v13 }
  0x75   : > { %1891 = vmatmul.msk.bf16.vlgmr.msrb.gmra.mxu1 %vm534_vm9, %v690_v22  ;;  %851 = vmatpush.bf16.msrb.mxu2 %v2185_v60 }
  0x77   : > { %741 = vmatpush.bf16.msrb.mxu0 %v1861_v57  ;;  %926 = vmatpush.bf16.msrb.mxu3 %v2187_v16 }
  0x79   : > { %852 = vmatpush.bf16.msrb.mxu2 %v2184_v2  ;;  %v433_v2 = vsel %vm2925_vm15, 0, %v432_v1  ;;  %v2201_v1 = vld [vmem:[#allocation13 + $0x20] sm:$0xff] }
  0x7a   : > { %1890 = vmatmul.msk.bf16.vlgmr.msrb.gmra.mxu0 %vm534_vm9, %v690_v22  ;;  %434 = vst [vmem:[#allocation3] sm:$0x1] %v433_v2 }
  0x7b   : > { %982 = vmatpush.bf16.msra.mxu0 %v2194_v63  ;;  %v2209_v63 = vld [vmem:[#allocation13 + $0x60] sm:$0xff] }
  0x7d   : > { %853 = vmatpush.bf16.msrb.mxu2 %v2183_v7 }
  0x7f   : > { %983 = vmatpush.bf16.msra.mxu0 %v2193_v4 }
  0x83   : > { %984 = vmatpush.bf16.msra.mxu0 %v2192_v8 }
  0x87   : > { %985 = vmatpush.bf16.msra.mxu0 %v2191_v14 }
  0xe2   : > { %v561_v58 = vpop.f32.mrf.mxu1 }
  0xe3   : > { %v562_v9 = vadd.f32 %v561_v58, %v486_v5 }
  0xe7   : > { %v547_v59 = vpop.f32.mrf.mxu0 }
  0xea   : > { %v563_v62 = vpop.f32.mrf.mxu1 }
  0xeb   : > { %v564_v18 = vadd.f32 %v563_v62, %v486_v5  ;;  %v436_v5 = vld [vmem:[#allocation3 + $0x8] sm:$0x1] }
  0xec   : > { %v437_v6 = vsel %vm435_vm0, 0, %v436_v5  ;;  %v2195_v5 = vld [vmem:[#allocation12] sm:$0xff] }
  0xed   : > { %438 = vst [vmem:[#allocation3 + $0x8] sm:$0x1] %v437_v6  ;;  %v2217_v6 = vld [vmem:[#allocation13 + $0xa0] sm:$0xff] }
  0xef   : > { %v549_v60 = vpop.f32.mrf.mxu0 }
  0xf2   : > { %v757_v11 = vpop.f32.mrf.mxu1 }
  0xf3   : > { %v665_v10 = vpop.f32.mrf.mxu3  ;;  %v651_v62 = vpop.f32.mrf.mxu2 }
  0xf4   : > { %v671_v12 = vadd.f32 %v665_v10, %v562_v9  ;;  %v485_v9 = vperm.slane %v2907_v61, 0 }
  0xf6   : > { %v763_v15 = vadd.f32 %v757_v11, %v671_v12  ;;  %v2361_v11 = vld [vmem:[%s3004_s4] ss:$0 sm:$0xff]  ;;  %v548_v12 = vadd.f32 %v547_v59, %v485_v9 }
  0xf7   : > { %v743_v4 = vpop.f32.mrf.mxu0  ;;  %v2202_v59 = vld [vmem:[#allocation13 + $0x28] sm:$0xff] }
  0xf8   : > { %vm766_vm12 = vcmp.gt.f32.partialorder %v763_v15, 0.0  ;;  %v768_v17 = vmul.f32 0.2, %v763_v15 }
  0xfa   : > { %v770_v19 = vsel %vm766_vm12, %v763_v15, %v768_v17  ;;  %v759_v24 = vpop.f32.mrf.mxu1  ;;  %v670_v17 = vadd.f32 %v651_v62, %v548_v12  ;;  %v2218_v62 = vld [vmem:[#allocation13 + $0xa8] sm:$0xff]  ;;  %v2199_v12 = vld [vmem:[#allocation13 + $0x10] sm:$0xff] }
  0xfb   : > { %v772_v20 = vpack.c.bf16 %v770_v19, %v770_v19  ;;  %v667_v21 = vpop.f32.mrf.mxu3  ;;  %v653_v7 = vpop.f32.mrf.mxu2 }
  0xfc   : > { %v673_v22 = vadd.f32 %v667_v21, %v564_v18  ;;  %v550_v21 = vadd.f32 %v549_v60, %v485_v9  ;;  %v2227_v9 = vld [vmem:[#allocation13 + $0xf0] sm:$0xff] }
  0xfd   : > { %v775_v23 = vshrl.u32 %v772_v20, 16  ;;  %v778_v27 = vshll.u32 %v772_v20, 16 }
  0xfe   : > { %v765_v25 = vadd.f32 %v759_v24, %v673_v22  ;;  %v762_v22 = vadd.f32 %v743_v4, %v670_v17  ;;  %v2228_v4 = vld [vmem:[#allocation13 + $0xf8] sm:$0xff]  ;;  %v2225_v17 = vld [vmem:[#allocation13 + $0xe0] sm:$0xff] }
  0xff   : > { %v777_v26 = vrot.slane %v775_v23, 7  ;;  %v745_v8 = vpop.f32.mrf.mxu0 }
 0x100   : > { %vm767_vm13 = vcmp.gt.f32.partialorder %v765_v25, 0.0  ;;  %v769_v28 = vmul.f32 0.2, %v765_v25 }
 0x101   : > { %v780_v29 = vor.u32 %v778_v27, %v777_v26  ;;  %v781_v38 = vrot.slane %v777_v26, 4  ;;  %v672_v27 = vadd.f32 %v653_v7, %v550_v21  ;;  %v2208_v7 = vld [vmem:[#allocation13 + $0x58] sm:$0xff] }
 0x102   : > { %v771_v30 = vsel %vm767_vm13, %v765_v25, %v769_v28  ;;  %v2236_v21 = vld [vmem:[#allocation13 + $0x138] sm:$0xff] }
 0x103   : > { %v794_v31 = vsel %vm2885_vm8, %v780_v29, %v2896_v3  ;;  %v773_v32 = vpack.c.bf16 %v771_v30, %v771_v30 }
 0x104   : > { %795 = vst [vmem:[#allocation2] sm:$0xf] %v794_v31 }
 0x105   : > { %v783_v34 = vshrl.u32 %v773_v32, 16  ;;  %v786_v36 = vshll.u32 %v773_v32, 16 }
 0x107   : > { %v785_v35 = vrot.slane %v783_v34, 7  ;;  %v764_v34 = vadd.f32 %v745_v8, %v672_v27  ;;  %v2200_v8 = vld [vmem:[#allocation13 + $0x18] sm:$0xff]  ;;  %v2234_v27 = vld [vmem:[#allocation13 + $0x128] sm:$0xff] }
 0x109   : > { %v788_v39 = vor.u32 %v786_v36, %v785_v35  ;;  %v790_v40 = vrot.slane %v785_v35, 4 }
 0x10b   : > { %v789_v41 = vsel %vm2879_vm7, %v781_v38, %v788_v39  ;;  %v798_v42 = vsel %vm2862_vm3, %v790_v40, %v797_v37  ;;  %v2251_v46 = vld [vmem:[#allocation2] sm:$0xe]  ;;  %vm1026_vm3 = vcmask 1043456   ;;  %v1028_v38 = vld [vmem:[#allocation3] sm:$0xf] }
 0x10c   : > { %796 = vst.msk [vmem:[#allocation2 + $0x4] sm:$0xf] %vm463_vm6, %v789_v41  ;;  %vm1027_vm5 = vmand %vm1026_vm3, %vm425_vm2  ;;  %vm1058_vm2 = vcmask 146432  }
 0x10d   : > { %799 = vst [vmem:[#allocation2 + $0x8] sm:$0x1] %v798_v42 }
 0x113   : > { %v2182_v44 = vld [vmem:[#allocation2] sm:$0xff] }
 0x114   : > { %v2250_v3 = vld [vmem:[#allocation2] sm:$0xf0]  ;;  %v862_v45 = vld [vmem:[#allocation2 + $0x8] sm:$0x1]  ;;  %1912 = vmatmul.msk.bf16.vlgmr.msrb.gmra.mxu2 %vm534_vm9, %v2182_v44 }
 0x115   : > { %v2247_v43 = vld [vmem:[#allocation2] sm:$0xff]   ;;  %v877_v48 = vunpack.c.l.b16 %v862_v45  ;;  %v2252_v49 = vor.u32 %v2251_v46, %v2250_v3  ;;  %v1032_v45 = vld [vmem:[#allocation3 + $0x8] sm:$0x1] }
 0x116   : > { %v883_v47 = vshll.u32 %v2247_v43, 16  ;;  %v881_v54 = vshrl.u32 %v2247_v43, 16 }
 0x117   : > { %v879_v50 = vpack.c.b16 %v877_v48, %v877_v48  ;;  %v948_v52 = vrot.slane %v2252_v49, 1 }
 0x118   : > { %v885_v51 = vrot.slane %v883_v47, 1 }
 0x119   : > { %v949_v53 = vrot.slane %v879_v50, 1  ;;  %v888_v0 = vshll.u32 %v879_v50, 16 }
 0x11a   : > { %v886_v56 = vor.u32 %v885_v51, %v881_v54  ;;  %v2212_v51 = vld [vmem:[#allocation13 + $0x78] sm:$0xff]  ;;  %v2203_v54 = vld [vmem:[#allocation13 + $0x30] sm:$0xff] }
 0x11b   : > { %v950_v55 = vsel %vm687_vm11, %v948_v52, %v949_v53  ;;  %v890_v57 = vrot.slane %v888_v0, 1  ;;  %v2204_v52 = vld [vmem:[#allocation13 + $0x38] sm:$0xff]  ;;  %1176 = vmatpush.bf16.msra.mxu2 %v2212_v51  ;;  %v2211_v53 = vld [vmem:[#allocation13 + $0x70] sm:$0xff] }
 0x11c   : > { %1946 = vmatmul.msk.bf16.vlgmr.msra.gmra.mxu0 %vm534_vm9, %v950_v55  ;;  %1237 = vmatpush.bf16.msra.mxu3 %v2204_v52  ;;  %v2220_v55 = vld [vmem:[#allocation13 + $0xb8] sm:$0xff] }
 0x11d   : > { %v891_v58 = vsel %vm586_vm10, %v886_v56, %v890_v57  ;;  %1315 = vmatpush.bf16.msrb.mxu0 %v2220_v55  ;;  %v2219_v57 = vld [vmem:[#allocation13 + $0xb0] sm:$0xff] }
 0x11e   : > { %1929 = vmatmul.msk.bf16.vlgmr.msrb.gmra.mxu3 %vm534_vm9, %v891_v58 }
 0x11f   : > { %1177 = vmatpush.bf16.msra.mxu2 %v2211_v53 }
 0x120   : > { %1238 = vmatpush.bf16.msra.mxu3 %v2203_v54 }
 0x121   : > { %1316 = vmatpush.bf16.msrb.mxu0 %v2219_v57 }
 0x123   : > { %1178 = vmatpush.bf16.msra.mxu2 %v2210_v33 }
 0x124   : > { %1239 = vmatpush.bf16.msra.mxu3 %v2202_v59 }
 0x125   : > { %1317 = vmatpush.bf16.msrb.mxu0 %v2218_v62 }
 0x127   : > { %1179 = vmatpush.bf16.msra.mxu2 %v2209_v63 }
 0x128   : > { %1240 = vmatpush.bf16.msra.mxu3 %v2201_v1 }
 0x129   : > { %1318 = vmatpush.bf16.msrb.mxu0 %v2217_v6 }
 0x12b   : > { %1180 = vmatpush.bf16.msra.mxu2 %v2208_v7 }
 0x12c   : > { %1241 = vmatpush.bf16.msra.mxu3 %v2200_v8 }
 0x130   : > { %1242 = vmatpush.bf16.msra.mxu3 %v2199_v12 }
 0x197   : > { %v855_v10 = vpop.f32.mrf.mxu2 }
 0x198   : > { %v856_v13 = vadd.f32 %v2361_v11, %v855_v10  ;;  %v2216_v10 = vld [vmem:[#allocation13 + $0x98] sm:$0xff] }
 0x199   : > { %v987_v14 = vpop.f32.mrf.mxu0  ;;  %1319 = vmatpush.bf16.msrb.mxu0 %v2216_v10 }
 0x19f   : > { %v857_v19 = vpop.f32.mrf.mxu2 }
 0x1a0   : > { %v858_v61 = vadd.f32 %v2361_v11, %v857_v19  ;;  %v2207_v11 = vld [vmem:[#allocation13 + $0x50] sm:$0xff]  ;;  %v2205_v19 = vld [vmem:[#allocation13 + $0x40] sm:$0xff] }
 0x1a1   : > { %v928_v15 = vpop.f32.mrf.mxu3  ;;  %v989_v29 = vpop.f32.mrf.mxu0  ;;  %1181 = vmatpush.bf16.msra.mxu2 %v2207_v11 }
 0x1a2   : > { %v933_v16 = vadd.f32 %v928_v15, %v856_v13  ;;  %v2226_v13 = vld [vmem:[#allocation13 + $0xe8] sm:$0xff] }
 0x1a3   : > { %v2206_v15 = vld [vmem:[#allocation13 + $0x48] sm:$0xff] }
 0x1a4   : > { %v992_v18 = vadd.f32 %v987_v14, %v933_v16  ;;  %v1037_v14 = vld [vmem:[#allocation12 + $0x8] sm:$0xf]  ;;  %v2198_v16 = vld [vmem:[#allocation13 + $0x8] sm:$0xff] }
 0x1a5   : > { %1182 = vmatpush.bf16.msra.mxu2 %v2206_v15  ;;  %1243 = vmatpush.bf16.msra.mxu3 %v2198_v16 }
 0x1a6   : > { %vm994_vm1 = vcmp.gt.f32.partialorder %v992_v18, 0.0  ;;  %v996_v20 = vmul.f32 0.2, %v992_v18 }
 0x1a8   : > { %v998_v23 = vsel %vm994_vm1, %v992_v18, %v996_v20  ;;  %v1046_v18 = vunpack.c.l.b16 %v1037_v14  ;;  %v2197_v20 = vld [vmem:[#allocation13] sm:$0xff] }
 0x1a9   : > { %v1000_v24 = vadd.f32 %v998_v23, %v762_v22  ;;  %v930_v25 = vpop.f32.mrf.mxu3  ;;  %v2244_v22 = vld [vmem:[#allocation13 + $0x178] sm:$0xff]  ;;  %1183 = vmatpush.bf16.msra.mxu2 %v2205_v19  ;;  %1244 = vmatpush.bf16.msra.mxu3 %v2197_v20 }
 0x1aa   : > { %v934_v26 = vadd.f32 %v930_v25, %v858_v61  ;;  %v1048_v23 = vpack.c.b16 %v1046_v18, %v1046_v18  ;;  %v2235_v61 = vld [vmem:[#allocation13 + $0x130] sm:$0xff] }
 0x1ab   : > { %1002 = vst [vmem:[%s2938_s19] sm:$0xff] %v1000_v24  ;;  %v1004_v28 = vpack.c.bf16 %v1000_v24, %v1000_v24  ;;  %v2243_v24 = vld [vmem:[#allocation13 + $0x170] sm:$0xff] }
 0x1ac   : > { %v993_v30 = vadd.f32 %v989_v29, %v934_v26  ;;  %v2215_v25 = vld [vmem:[#allocation13 + $0x90] sm:$0xff]  ;;  %v2224_v26 = vld [vmem:[#allocation13 + $0xd8] sm:$0xff]  ;;  %v2214_v29 = vld [vmem:[#allocation13 + $0x88] sm:$0xff] }
 0x1ad   : > { %v1007_v31 = vshrl.u32 %v1004_v28, 16  ;;  %v1010_v36 = vshll.u32 %v1004_v28, 16  ;;  %1478 = vmatpush.bf16.msrb.mxu2 %v2236_v21  ;;  %1562 = vmatpush.bf16.msrb.mxu3 %v2244_v22  ;;  %v2242_v28 = vld [vmem:[#allocation13 + $0x168] sm:$0xff] }
 0x1ae   : > { %vm995_vm4 = vcmp.gt.f32.partialorder %v993_v30, 0.0  ;;  %v997_v32 = vmul.f32 0.2, %v993_v30  ;;  %1320 = vmatpush.bf16.msrb.mxu0 %v2215_v25 }
 0x1af   : > { %v1009_v35 = vrot.slane %v1007_v31, 7  ;;  %v2233_v31 = vld [vmem:[#allocation13 + $0x120] sm:$0xff] }
 0x1b0   : > { %v999_v37 = vsel %vm995_vm4, %v993_v30, %v997_v32  ;;  %v2223_v30 = vld [vmem:[#allocation13 + $0xd0] sm:$0xff]  ;;  %v2241_v32 = vld [vmem:[#allocation13 + $0x160] sm:$0xff] }
 0x1b1   : > { %v1012_v39 = vor.u32 %v1010_v36, %v1009_v35  ;;  %v1001_v40 = vadd.f32 %v999_v37, %v764_v34  ;;  %v1013_v46 = vrot.slane %v1009_v35, 4  ;;  %1479 = vmatpush.bf16.msrb.mxu2 %v2235_v61  ;;  %1563 = vmatpush.bf16.msrb.mxu3 %v2243_v24  ;;  %v2213_v34 = vld [vmem:[#allocation13 + $0x80] sm:$0xff]  ;;  %v2222_v35 = vld [vmem:[#allocation13 + $0xc8] sm:$0xff]  ;;  %v2232_v36 = vld [vmem:[#allocation13 + $0x118] sm:$0xff] }
 0x1b2   : > { %1321 = vmatpush.bf16.msrb.mxu0 %v2214_v29  ;;  %v2240_v37 = vld [vmem:[#allocation13 + $0x158] sm:$0xff] }
 0x1b3   : > { %1003 = vst [vmem:[%s2938_s19 + $0x8] sm:$0xff] %v1001_v40  ;;  %v1005_v41 = vpack.c.bf16 %v1001_v40, %v1001_v40  ;;  %v1029_v42 = vsel %vm1027_vm5, %v1012_v39, %v1028_v38  ;;  %v2221_v38 = vld [vmem:[#allocation13 + $0xc0] sm:$0xff]  ;;  %v2231_v39 = vld [vmem:[#allocation13 + $0x110] sm:$0xff] }
 0x1b4   : > { %1030 = vst [vmem:[#allocation3] sm:$0xf] %v1029_v42  ;;  %v2239_v40 = vld [vmem:[#allocation13 + $0x150] sm:$0xff]  ;;  %v2238_v42 = vld [vmem:[#allocation13 + $0x148] sm:$0xff] }
 0x1b5   : > { %v1015_v44 = vshrl.u32 %v1005_v41, 16  ;;  %v1018_v43 = vshll.u32 %v1005_v41, 16  ;;  %1480 = vmatpush.bf16.msrb.mxu2 %v2234_v27  ;;  %1564 = vmatpush.bf16.msrb.mxu3 %v2242_v28  ;;  %v2230_v41 = vld [vmem:[#allocation13 + $0x108] sm:$0xff] }
 0x1b6   : > { %1322 = vmatpush.bf16.msrb.mxu0 %v2213_v34 }
 0x1b7   : > { %v1017_v3 = vrot.slane %v1015_v44, 7  ;;  %v2229_v44 = vld [vmem:[#allocation13 + $0x100] sm:$0xff] }
 0x1b9   : > { %v1020_v47 = vor.u32 %v1018_v43, %v1017_v3  ;;  %v1022_v48 = vrot.slane %v1017_v3, 4  ;;  %1481 = vmatpush.bf16.msrb.mxu2 %v2233_v31  ;;  %1565 = vmatpush.bf16.msrb.mxu3 %v2241_v32  ;;  %v2237_v3 = vld [vmem:[#allocation13 + $0x140] sm:$0xff] }
 0x1bb   : > { %v1021_v49 = vsel %vm2879_vm7, %v1013_v46, %v1020_v47  ;;  %v1033_v50 = vsel %vm2925_vm15, %v1022_v48, %v1032_v45 }
 0x1bc   : > { %1031 = vst [vmem:[#allocation3 + $0x4] sm:$0xf] %v1021_v49 }
 0x1bd   : > { %1034 = vst [vmem:[#allocation3 + $0x8] sm:$0x1] %v1033_v50  ;;  %1482 = vmatpush.bf16.msrb.mxu2 %v2232_v36  ;;  %1566 = vmatpush.bf16.msrb.mxu3 %v2240_v37 }
 0x1c1   : > { %1483 = vmatpush.bf16.msrb.mxu2 %v2231_v39  ;;  %1567 = vmatpush.bf16.msrb.mxu3 %v2239_v40 }
 0x1c3   : > { %v2196_v2 = vld [vmem:[#allocation3] sm:$0xff] }
 0x1c4   : > { %v1040_v0 = vld [vmem:[#allocation3 + $0x8] sm:$0x1] }
 0x1c5   : > { %v1054_v56 = vunpack.c.l.b16 %v1040_v0  ;;  %1484 = vmatpush.bf16.msrb.mxu2 %v2230_v41  ;;  %1568 = vmatpush.bf16.msrb.mxu3 %v2238_v42 }
 0x1c7   : > { %v1056_v58 = vpack.c.b16 %v1054_v56, %v1054_v56 }
 0x1c9   : > { %v1067_v60 = vsel %vm430_vm14, %v1056_v58, 0  ;;  %1485 = vmatpush.bf16.msrb.mxu2 %v2229_v44  ;;  %1569 = vmatpush.bf16.msrb.mxu3 %v2237_v3 }
 0x1ca   : > { %1075 = vmatpush.bf16.msra.mxu1 %v1067_v60 }
 0x1ce   : > { %1076 = vmatpush.bf16.msra.mxu1 %v2196_v2 }
 0x1d1   : > { %1955 = vmatmul.msk.bf16.vlgmr.msra.gmra.mxu1 %vm1058_vm2, %v2195_v5 }
 0x1d2   : > { %1399 = vmatpush.bf16.msrb.mxu1 %v2228_v4 }
 0x1d6   : > { %1400 = vmatpush.bf16.msrb.mxu1 %v2227_v9 }
 0x1da   : > { %1401 = vmatpush.bf16.msrb.mxu1 %v2226_v13 }
 0x1de   : > { %1402 = vmatpush.bf16.msrb.mxu1 %v2225_v17 }
 0x1e1   : > { %1956 = vmatmul.msk.bf16.gmra.mxu1 %vm1058_vm2, %v1048_v23 }
 0x1e2   : > { %1403 = vmatpush.bf16.msrb.mxu1 %v2224_v26 }
 0x1e6   : > { %1404 = vmatpush.bf16.msrb.mxu1 %v2223_v30 }
 0x1ea   : > { %1405 = vmatpush.bf16.msrb.mxu1 %v2222_v35 }
 0x1ee   : > { %1406 = vmatpush.bf16.msrb.mxu1 %v2221_v38 }
 0x24e   : > { %v1078_v43 = vpop.f32.mrf.mxu1 }
 0x24f   : > { %v1087_v45 = vpack.c.bf16 %v1078_v43, %v1078_v43 }
 0x251   : > { %v1124_v46 = vunpack.c.l.b16 %v1087_v45  ;;  %1245 = vmatmul.bf16.vlgmr.msra.gmra.mxu3 %v1087_v45 }
 0x253   : > { %v1125_v47 = vpack.c.b16 %v1124_v46, %v1124_v46 }
 0x255   : > { %v1126_v48 = vrot.slane %v1125_v47, 2 }
 0x256   : > { %v1080_v49 = vpop.f32.mrf.mxu1 }
 0x257   : > { %v1088_v50 = vpack.c.bf16 %v1080_v49, %v1080_v49  ;;  %1184 = vmatmul.bf16.vlgmr.msra.gmra.mxu2 %v1126_v48 }
 0x259   : > { %v1347_v51 = vunpack.c.l.b16 %v1088_v50  ;;  %1323 = vmatmul.bf16.vlgmr.msrb.gmra.mxu0 %v1088_v50 }
 0x25b   : > { %v1348_v52 = vpack.c.b16 %v1347_v51, %v1347_v51 }
 0x25d   : > { %v1349_v53 = vrot.slane %v1348_v52, 2 }
 0x25e   : > { %v1083_v54 = vpop.f32.mrf.mxu1 }
 0x25f   : > { %v1089_v0 = vpack.c.bf16 %v1083_v54, %v1083_v54  ;;  %1407 = vmatmul.bf16.vlgmr.msrb.gmra.mxu1 %v1349_v53 }
 0x261   : > { %v1510_v55 = vunpack.c.l.b16 %v1089_v0 }
 0x263   : > { %v1511_v56 = vpack.c.b16 %v1510_v55, %v1510_v55 }
 0x265   : > { %v1512_v57 = vrot.slane %v1511_v56, 2 }
 0x266   : > { %v1085_v58 = vpop.f32.mrf.mxu1 }
 0x267   : > { %1486 = vmatmul.bf16.vlgmr.msrb.gmra.mxu2 %v1089_v0  ;;  %1570 = vmatmul.bf16.vlgmr.msrb.gmra.mxu3 %v1512_v57 }
 0x268   : > { %2569 = shalt.err (!%p2566_p9)
}
 0x269   : > { %s2663_s19 = smov 128   ;;  %s2664_s16 = smov 8  }
 0x26a   : > { %2275 = dma.vmem_to_hbm [thread:$0]  (%p2805_p13), %s1596_s9, 256, %s1598_s18, %s1578_s11, %s2663_s19, %s2663_s19, %s2664_s16  }
 0x26b   : > { %s1785_s0 = sshll.u32 %s2839_s22, 2  ;;  %s2153_s10 = sshll.u32 %s2734_s12, 2 }
 0x26c   : > { %s1610_s1 = scalar_lea.hbm %s3008_s8, %s2153_s10  ;;  %s417_s9 = scalar_lea.vmem [#allocation16], %s1785_s0 }
 0x26d   : > { %s1612_s18 = sshll.u32 %s417_s9, 4  ;;  %s1614_s11 = sshll.u32 %s1610_s1, 4  ;;  %s1613_s18 = int_to_ptr.vmem [resolvable:$true] %s1612_s18  ;;  %s1615_s11 = int_to_ptr.hbm [resolvable:$true] %s1614_s11 }
 0x26e   : > { %s1583_s2 = scalar_lea.sflag [#allocation17], %s2839_s22  ;;  %s2584_s23 = sshra.s32 %s1615_s11, 4  ;;  %s2585_s23 = int_to_ptr.hbm [resolvable:$true] %s2584_s23 }
 0x26f   : > { %s2586_s12 = scalar_lea.hbm %s2585_s23, 4  ;;  %s2590_s25 = scalar_lea.hbm %s3008_s8, 8 }
 0x270   : > { %p2587_p10 = scmp.ne.s32.totalorder %s2585_s23, %s2586_s12  ;;  %p2591_p2 = scmp.lt.s32.totalorder %s2585_s23, %s3008_s8 }
 0x271   : > { %p2592_p6 = scmp.lt.s32.totalorder %s2590_s25, %s2586_s12 }
 0x272   : > { %p2588_p11 = pnand %p2587_p10, %p2805_p13 }
 0x273   : > { %p2593_p1 = por %p2592_p6, %p2591_p2 }
 0x274   : > { %p2589_p0 = pneg %p2588_p11 }
 0x276   : > { %p2594_p3 = pnand %p2593_p1, %p2589_p0 }
 0x2d4   : > { %v1246_v33 = vpop.f32.mrf.mxu3 }
 0x2d6   : > { %v1324_v59 = vpop.f32.mrf.mxu0 }
 0x2da   : > { %v1185_v60 = vpop.f32.mrf.mxu2 }
 0x2db   : > { %v1247_v2 = vadd.f32 %v1246_v33, %v1185_v60 }
 0x2dc   : > { %v1408_v62 = vpop.f32.mrf.mxu1  ;;  %v1248_v63 = vpop.f32.mrf.mxu3 }
 0x2dd   : > { %v1328_v6 = vadd.f32 %v1324_v59, %v1247_v2 }
 0x2de   : > { %v1326_v1 = vpop.f32.mrf.mxu0 }
 0x2df   : > { %v1412_v7 = vadd.f32 %v1408_v62, %v1328_v6 }
 0x2e2   : > { %v1187_v4 = vpop.f32.mrf.mxu2 }
 0x2e4   : > { %v1410_v5 = vpop.f32.mrf.mxu1 }
 0x2ea   : > { %v1487_v8 = vpop.f32.mrf.mxu2  ;;  %v1571_v9 = vpop.f32.mrf.mxu3 }
 0x2eb   : > { %v1491_v10 = vadd.f32 %v1487_v8, %v1412_v7 }
 0x2ed   : > { %v1575_v11 = vadd.f32 %v1571_v9, %v1491_v10 }
 0x2ef   : > { %1576 = vst [vmem:[%s417_s9] sm:$0xf] %v1575_v11 }
 0x2f0   : > { %2597 = shalt.err (!%p2594_p3)
}
 0x2f1   : > { %2276 = dma.vmem_to_hbm [thread:$0]  (%p2805_p13), %s1613_s18, 64, %s1615_s11, %s1583_s2  }
 0x2f2   : > { %v1489_v12 = vpop.f32.mrf.mxu2  ;;  %v1573_v13 = vpop.f32.mrf.mxu3 }
 0x2f3 PF: > { %s1626_s22 = sand.u32 1, %s2640_s27   ;;  %p3035_p5 = scmp.ge.s32.totalorder %s2652_s30, 2 }
 0x2f4   : > { %s1627_s0 = scalar_lea.sflag [#allocation6], %s1626_s22 }
 0x2f5   : > { %p2300_p12 = pnand %p3035_p5, %p2810_p4 }
 0x2f7   : > { %p2301_p8 = pneg %p2300_p12 }
 0x2f9   : > { %2631 = dma.done.wait (%p2301_p8), %s1627_s0, 256  }
 0x2fa   : > { %2633 = vsyncadd (%p2301_p8), %s1627_s0, 4294967040  ;;  %s1637_s10 = scalar_lea.sflag [#allocation17], %s1626_s22 }
 0x2fb   : > { %2635 = dma.done.wait (%p2301_p8), %s1637_s10, 64  }
 0x2fc   : > { %2637 = vsyncadd (%p2301_p8), %s1637_s10, 4294967232  ;;  %p28_p13 = scmp.ge.s32.totalorder %s2785_s14, 4   ;;  %s3036_s27 = smov %s2644_s28 }
 0x2fd   : > { %s3037_s28 = smov %s2648_s29  ;;  %s3038_s29 = smov %s2797_s15 }
 0x2fe   : > { %s3039_s30 = smov %s2785_s14  ;;  %30 = sbr.rel (!%p28_p13) target bundleno = 14 (0xe), region = 139 }
 0x303   :  { %1643 = vsyncpa [#allocation5], 1 }
 0x304   :  { %1645 = vsyncpa [#allocation5 + $0x1], 1 }
 0x305   :  { %1646 = vsyncpa [#allocation8], 1 }
 0x306   :  { %1647 = vsyncpa [#allocation11], 1 }
 0x307   :  { %1648 = vsyncpa [#allocation14], 1 }
 0x308   :  { %1649 = vsyncpa [#allocation6], 1 }
 0x309   :  { %1651 = vsyncpa [#allocation6 + $0x1], 1 }
 0x30a   :  { %1652 = vsyncpa [#allocation17], 1 }
 0x30b   :  { %1654 = vsyncpa [#allocation17 + $0x1], 1 }

</bundles_post_ra>
